<compile_context>
chip_gen: v7x
topology: tpu7x:2x2x1
jax: 0.10.0
libtpu: 0.0.40
codegen_flags: <defaults>
</compile_context>

<pallas_src>
import functools
import math

import jax
import jax.numpy as jnp
from jax.experimental import pallas as pl
from jax.experimental.pallas import tpu as pltpu

# ----------------------------- model config (small, lane-dense) ------------------
VOCAB = 100
MAX_POS = 64
TYPE_VOCAB = 2
HIDDEN = 128          # stands in for 768 (lane-dense)
NUM_HEADS = 4
HEAD_DIM = HIDDEN // NUM_HEADS
INTER = 256           # stands in for 3072
NUM_LAYERS = 2        # stands in for 12
CLS_DIM = 128         # stands in for 512   (classifier output; lane-dense stand-in)
N_EXTRA = 5           # gender, education, race, age, income (1 scalar each)
PRE_FINAL_OUT = 128   # stands in for 256   (lane-dense stand-in)
LN_EPS = 1e-5
PAD_IDX = 1           # RoBERTa padding_idx for position ids

_VMEM_SPEC = pl.BlockSpec(memory_space=pltpu.MemorySpace.VMEM)


# ----------------------------- in-kernel helpers ---------------------------------
def _ln(x, g, b):
    """LayerNorm over the last axis, f32 math."""
    mu = jnp.mean(x, axis=-1, keepdims=True)
    var = jnp.mean((x - mu) ** 2, axis=-1, keepdims=True)
    return (x - mu) * jax.lax.rsqrt(var + LN_EPS) * g + b


# ----------------------------- embedding LayerNorm (row-tiled) --------------------
def _layernorm_kernel(x_ref, g_ref, b_ref, o_ref):
    o_ref[...] = _ln(x_ref[...].astype(jnp.float32),
                     g_ref[...], b_ref[...]).astype(o_ref.dtype)


def pallas_layernorm(x, g, b, out_dtype=jnp.bfloat16):
    m, h = x.shape
    # lane-dense row tiles; small here, scales to (256, H) blocks at real dims
    rb = 256 if m % 256 == 0 else (8 if m % 8 == 0 else m)
    return pl.pallas_call(
        _layernorm_kernel,
        out_shape=jax.ShapeDtypeStruct((m, h), out_dtype),
        grid=(m // rb,),
        in_specs=[pl.BlockSpec((rb, h), lambda i: (i, 0)),
                  pl.BlockSpec((1, h), lambda i: (0, 0)),
                  pl.BlockSpec((1, h), lambda i: (0, 0))],
        out_specs=pl.BlockSpec((rb, h), lambda i: (i, 0)),
        compiler_params=pltpu.CompilerParams(dimension_semantics=("parallel",)),
    )(x, g.reshape(1, h), b.reshape(1, h))


# ----------------------------- fused encoder layer --------------------------------
def _encoder_layer_kernel(x_ref, mask_ref,
                          wqkv_ref, bqkv_ref, wo_ref, bo_ref,
                          ln1_g_ref, ln1_b_ref,
                          w1_ref, b1_ref, w2_ref, b2_ref,
                          ln2_g_ref, ln2_b_ref,
                          o_ref, *, num_heads, head_dim):
    """One full encoder layer for the whole (batch-folded) batch (post-LN, GELU FFN)."""
    B, S, H = x_ref.shape
    x_bf = x_ref[...]                                              # (B, S, H) bf16
    x2d_f32 = x_bf.reshape(B * S, H).astype(jnp.float32)
    x2d_bf = x_bf.reshape(B * S, H)

    # fused QKV projection on the batch-folded M dimension (1/sqrt(d) folded into wqkv)
    qkv = jnp.dot(x2d_bf, wqkv_ref[...],
                  preferred_element_type=jnp.float32) + bqkv_ref[...]   # (B*S, 3H) f32
    q = qkv[:, :H].reshape(B, S, H)
    k = qkv[:, H:2 * H].reshape(B, S, H)
    v = qkv[:, 2 * H:].reshape(B, S, H)

    mask = mask_ref[...]                                           # (B, 1, S) additive f32

    # per-head attention, batched over sequences; contexts concatenated on lanes
    ctx_parts = []
    for h in range(num_heads):
        lo = h * head_dim
        qh = q[:, :, lo:lo + head_dim].astype(jnp.bfloat16)        # (B, S, D)
        kh = k[:, :, lo:lo + head_dim].astype(jnp.bfloat16)
        vh = v[:, :, lo:lo + head_dim].astype(jnp.bfloat16)
        s = jnp.einsum('bqd,bkd->bqk', qh, kh,
                       preferred_element_type=jnp.float32) + mask  # (B, S, S) f32
        m = jnp.max(s, axis=-1, keepdims=True)
        p = jnp.exp(s - m)
        denom = jnp.sum(p, axis=-1, keepdims=True)
        probs = p * pl.reciprocal(denom, approx=True)              # EUP divide
        ctx_parts.append(jnp.einsum('bqk,bkd->bqd', probs.astype(jnp.bfloat16), vh,
                                    preferred_element_type=jnp.float32))
    ctx = jnp.concatenate(ctx_parts, axis=-1)                      # (B, S, H) f32

    # single K=H out-projection on the batch-folded M dimension
    attn = jnp.dot(ctx.reshape(B * S, H).astype(jnp.bfloat16), wo_ref[...],
                   preferred_element_type=jnp.float32) + bo_ref[...]    # (B*S, H) f32

    # residual + LayerNorm 1
    x1 = _ln(x2d_f32 + attn, ln1_g_ref[...], ln1_b_ref[...])

    # FFN: w1 + GELU + w2, residual + LayerNorm 2
    hmid = jnp.dot(x1.astype(jnp.bfloat16), w1_ref[...],
                   preferred_element_type=jnp.float32) + b1_ref[...]
    # TODO(synk): HF RoBERTa uses exact erf GELU; tanh approximation used here.
    hmid = jax.nn.gelu(hmid, approximate=True)
    y = jnp.dot(hmid.astype(jnp.bfloat16), w2_ref[...],
                preferred_element_type=jnp.float32) + b2_ref[...]
    x2 = _ln(x1 + y, ln2_g_ref[...], ln2_b_ref[...])
    o_ref[...] = x2.reshape(B, S, H).astype(o_ref.dtype)


def pallas_encoder_layer(x, add_mask, lp):
    """x: (B, S, H) bf16; add_mask: (B, 1, S) additive f32.

    No grid at these toy sizes: batch is folded into the matmul M dimension inside the
    kernel, and everything (x + all layer weights) comfortably fits VMEM in one step.
    At real roberta-base dims this call would tile over batch-folded row blocks.
    """
    B, S, H = x.shape
    kern = functools.partial(_encoder_layer_kernel, num_heads=NUM_HEADS,
                             head_dim=HEAD_DIM)
    return pl.pallas_call(
        kern,
        out_shape=jax.ShapeDtypeStruct((B, S, H), jnp.bfloat16),
        in_specs=[_VMEM_SPEC] * 14,
        out_specs=_VMEM_SPEC,
    )(x, add_mask,
      lp["wqkv"], lp["bqkv"].reshape(1, 3 * H),
      lp["wo"], lp["bo"].reshape(1, H),
      lp["ln1_g"].reshape(1, H), lp["ln1_b"].reshape(1, H),
      lp["w1"], lp["b1"].reshape(1, INTER),
      lp["w2"], lp["b2"].reshape(1, H),
      lp["ln2_g"].reshape(1, H), lp["ln2_b"].reshape(1, H))


# ----------------------------- fused classification head --------------------------
def _head_kernel(pool_ref, extras_ref, wpc_ref, bpc_ref, wcls_ref, bcls_ref,
                 wpf_a_ref, wpf_b_ref, bpf_ref, wf_ref, bf_ref, o_ref):
    """Whole classification head fused; intermediates are lane-dense (128-wide)."""
    x = pool_ref[...].astype(jnp.float32)                          # (B, H)
    p = jnp.maximum(jnp.dot(x, wpc_ref[...],
                            preferred_element_type=jnp.float32) + bpc_ref[...], 0.0)
    # self.dropout(0.2): eval-mode identity.
    # TODO(synk): no train-mode dropout in this kernel.
    c = jnp.maximum(jnp.dot(p, wcls_ref[...],
                            preferred_element_type=jnp.float32) + bcls_ref[...], 0.0)
    # torch.cat([output, extras], 1) @ pre_final_w  ==  output@W[:CLS] + extras@W[CLS:]
    z = (jnp.dot(c, wpf_a_ref[...], preferred_element_type=jnp.float32)
         + jnp.dot(extras_ref[...], wpf_b_ref[...], preferred_element_type=jnp.float32)
         + bpf_ref[...])
    z = jnp.maximum(z, 0.0)
    o_ref[...] = (jnp.dot(z, wf_ref[...], preferred_element_type=jnp.float32)
                  + bf_ref[...]).astype(o_ref.dtype)


def pallas_head(pooler, extras, params):
    B = pooler.shape[0]
    wpf = params["pre_final_w"]
    return pl.pallas_call(
        _head_kernel,
        out_shape=jax.ShapeDtypeStruct((B, 1), jnp.float32),
        in_specs=[_VMEM_SPEC] * 11,
        out_specs=_VMEM_SPEC,
    )(pooler, extras,
      params["pre_classifier_w"], params["pre_classifier_b"].reshape(1, -1),
      params["classifier_w"], params["classifier_b"].reshape(1, -1),
      wpf[:CLS_DIM], wpf[CLS_DIM:], params["pre_final_b"].reshape(1, -1),
      params["final_w"], params["final_b"].reshape(1, -1))


# ----------------------------- parameter init ------------------------------------
def _dense(key, fan_in, fan_out):
    kw, kb = jax.random.split(key)
    w = jax.random.normal(kw, (fan_in, fan_out), jnp.float32) * 0.02
    b = jax.random.normal(kb, (fan_out,), jnp.float32) * 0.02
    return w, b


def init_params(key):
    keys = jax.random.split(key, 4 + NUM_LAYERS)
    p = {}
    p["word_emb"] = jax.random.normal(keys[0], (VOCAB, HIDDEN), jnp.float32) * 0.02
    p["pos_emb"] = jax.random.normal(keys[1], (MAX_POS, HIDDEN), jnp.float32) * 0.02
    p["type_emb"] = jax.random.normal(keys[2], (TYPE_VOCAB, HIDDEN), jnp.float32) * 0.02
    p["emb_ln_g"] = jnp.ones((HIDDEN,), jnp.float32)
    p["emb_ln_b"] = jnp.zeros((HIDDEN,), jnp.float32)

    scale = 1.0 / math.sqrt(HEAD_DIM)
    layers = []
    for li in range(NUM_LAYERS):
        lk = jax.random.split(keys[3 + li], 4)
        lp = {}
        wqkv, bqkv = _dense(lk[0], HIDDEN, 3 * HIDDEN)             # fused q|k|v
        # fold 1/sqrt(head_dim) into the q columns once (constant weight transform)
        wqkv = wqkv.at[:, :HIDDEN].multiply(scale)
        bqkv = bqkv.at[:HIDDEN].multiply(scale)
        lp["wqkv"], lp["bqkv"] = wqkv.astype(jnp.bfloat16), bqkv
        wo, lp["bo"] = _dense(lk[1], HIDDEN, HIDDEN)
        lp["wo"] = wo.astype(jnp.bfloat16)
        lp["ln1_g"], lp["ln1_b"] = jnp.ones((HIDDEN,)), jnp.zeros((HIDDEN,))
        w1, lp["b1"] = _dense(lk[2], HIDDEN, INTER)
        w2, lp["b2"] = _dense(lk[3], INTER, HIDDEN)
        lp["w1"], lp["w2"] = w1.astype(jnp.bfloat16), w2.astype(jnp.bfloat16)
        lp["ln2_g"], lp["ln2_b"] = jnp.ones((HIDDEN,)), jnp.zeros((HIDDEN,))
        layers.append(lp)
    p["layers"] = layers

    hk = jax.random.split(keys[3 + NUM_LAYERS], 4)
    p["pre_classifier_w"], p["pre_classifier_b"] = _dense(hk[0], HIDDEN, HIDDEN)
    p["classifier_w"], p["classifier_b"] = _dense(hk[1], HIDDEN, CLS_DIM)
    p["pre_final_w"], p["pre_final_b"] = _dense(hk[2], CLS_DIM + N_EXTRA, PRE_FINAL_OUT)
    p["final_w"], p["final_b"] = _dense(hk[3], PRE_FINAL_OUT, 1)
    return p


# ----------------------------- forward pass --------------------------------------
def roberta_class_forward(params, input_ids, attention_mask, token_type_ids,
                          gender, education, race, age, income):
    B, S = input_ids.shape
    # --- RoBERTa backbone (l1) ---
    # Embedding lookups stay in JAX (gather has no clean blocked Pallas form here).
    # Position ids follow HF create_position_ids_from_input_ids (padding-aware).
    mask_i = attention_mask.astype(jnp.int32)
    pos_ids = jnp.cumsum(mask_i, axis=1) * mask_i + PAD_IDX        # (B, S)
    emb = (params["word_emb"][input_ids]
           + params["pos_emb"][pos_ids]
           + params["type_emb"][token_type_ids])
    x = pallas_layernorm(emb.reshape(B * S, HIDDEN),
                         params["emb_ln_g"], params["emb_ln_b"]).reshape(B, S, HIDDEN)

    add_mask = ((1.0 - attention_mask.astype(jnp.float32)) * -1e9).reshape(B, 1, S)
    for lp in params["layers"]:
        x = pallas_encoder_layer(x, add_mask, lp)
    hidden_state = x                                               # output_1[0]  (bf16)

    # --- classification head (fully fused, lane-dense intermediates) ---
    pooler = hidden_state[:, 0]                                    # (B, HIDDEN) bf16
    extras = jnp.concatenate([gender, education, race, age, income], axis=1)  # (B, 5)
    return pallas_head(pooler, extras, params)                     # (B, 1) f32


# ----------------------------- driver ---------------------------------------------
if __name__ == "__main__":
    B, S = 2, 8
    key = jax.random.PRNGKey(0)
    k_param, k_ids, k_g, k_e, k_r, k_a, k_i = jax.random.split(key, 7)

    params = init_params(k_param)

    input_ids = jax.random.randint(k_ids, (B, S), 0, VOCAB, dtype=jnp.int32)
    attention_mask = jnp.concatenate(
        [jnp.ones((B, S - 2), jnp.int32), jnp.zeros((B, 2), jnp.int32)], axis=1)
    token_type_ids = jnp.zeros((B, S), jnp.int32)
    gender = jax.random.normal(k_g, (B, 1), jnp.float32)
    education = jax.random.normal(k_e, (B, 1), jnp.float32)
    race = jax.random.normal(k_r, (B, 1), jnp.float32)
    age = jax.random.normal(k_a, (B, 1), jnp.float32)
    income = jax.random.normal(k_i, (B, 1), jnp.float32)

    fwd = jax.jit(roberta_class_forward)
    out = fwd(params, input_ids, attention_mask, token_type_ids,
              gender, education, race, age, income)
    out = jax.block_until_ready(out)
    assert out.shape == (B, 1) and out.dtype == jnp.float32
    assert bool(jnp.all(jnp.isfinite(out)))
    print("KERNEL_OK")
</pallas_src>

<mosaic_0001>
module attributes {stable_mosaic.version = 11 : i64} {
  func.func @_layernorm_kernel(%arg0: i32, %arg1: memref<8x128xf32, #tpu.memory_space<vmem>>, %arg2: memref<1x128xf32, #tpu.memory_space<vmem>>, %arg3: memref<1x128xf32, #tpu.memory_space<vmem>>, %arg4: memref<8x128xbf16, #tpu.memory_space<vmem>>) attributes {dimension_semantics = [#tpu.dimension_semantics<parallel>], iteration_bounds = array<i64: 2>, scalar_prefetch = 0 : i64, scratch_operands = 0 : i64, tpu.core_type = #tpu.core_type<tc>, window_params = [{transform_indices = @transform_0, window_bounds = array<i64: 8, 128>}, {pipeline_mode = #tpu.pipeline_mode<synchronous>, transform_indices = @transform_1, window_bounds = array<i64: 1, 128>}, {pipeline_mode = #tpu.pipeline_mode<synchronous>, transform_indices = @transform_2, window_bounds = array<i64: 1, 128>}, {transform_indices = @transform_3, window_bounds = array<i64: 8, 128>}]} {
    %c0 = arith.constant 0 : index
    %c0_0 = arith.constant 0 : index
    %0 = vector.load %arg1[%c0, %c0_0] : memref<8x128xf32, #tpu.memory_space<vmem>>, vector<8x128xf32>
    %c0_1 = arith.constant 0 : index
    %c0_2 = arith.constant 0 : index
    %1 = vector.load %arg2[%c0_1, %c0_2] : memref<1x128xf32, #tpu.memory_space<vmem>>, vector<1x128xf32>
    %c0_3 = arith.constant 0 : index
    %c0_4 = arith.constant 0 : index
    %2 = vector.load %arg3[%c0_3, %c0_4] : memref<1x128xf32, #tpu.memory_space<vmem>>, vector<1x128xf32>
    %cst = arith.constant dense<0.000000e+00> : vector<8xf32>
    %3 = vector.multi_reduction <add>, %0, %cst [1] : vector<8x128xf32> to vector<8xf32>
    %4 = vector.shape_cast %3 : vector<8xf32> to vector<8x1xf32>
    %cst_5 = arith.constant 1.280000e+02 : f32
    %5 = vector.broadcast %cst_5 : f32 to vector<8x1xf32>
    %6 = arith.divf %4, %5 : vector<8x1xf32>
    %7 = vector.broadcast %6 : vector<8x1xf32> to vector<8x128xf32>
    %8 = arith.subf %0, %7 : vector<8x128xf32>
    %9 = arith.mulf %8, %8 : vector<8x128xf32>
    %cst_6 = arith.constant dense<0.000000e+00> : vector<8xf32>
    %10 = vector.multi_reduction <add>, %9, %cst_6 [1] : vector<8x128xf32> to vector<8xf32>
    %11 = vector.shape_cast %10 : vector<8xf32> to vector<8x1xf32>
    %cst_7 = arith.constant 1.280000e+02 : f32
    %12 = vector.broadcast %cst_7 : f32 to vector<8x1xf32>
    %13 = arith.divf %11, %12 : vector<8x1xf32>
    %14 = vector.broadcast %6 : vector<8x1xf32> to vector<8x128xf32>
    %15 = arith.subf %0, %14 : vector<8x128xf32>
    %cst_8 = arith.constant 9.99999974E-6 : f32
    %16 = vector.broadcast %cst_8 : f32 to vector<8x1xf32>
    %17 = arith.addf %13, %16 : vector<8x1xf32>
    %18 = math.rsqrt %17 : vector<8x1xf32>
    %19 = vector.broadcast %18 : vector<8x1xf32> to vector<8x128xf32>
    %20 = arith.mulf %15, %19 : vector<8x128xf32>
    %21 = vector.broadcast %1 : vector<1x128xf32> to vector<8x128xf32>
    %22 = arith.mulf %20, %21 : vector<8x128xf32>
    %23 = vector.broadcast %2 : vector<1x128xf32> to vector<8x128xf32>
    %24 = arith.addf %22, %23 : vector<8x128xf32>
    %25 = arith.truncf %24 : vector<8x128xf32> to vector<8x128xbf16>
    %c0_9 = arith.constant 0 : index
    %c0_10 = arith.constant 0 : index
    %26 = vector.load %arg4[%c0_9, %c0_10] : memref<8x128xbf16, #tpu.memory_space<vmem>>, vector<8x128xbf16>
    tpu.vector_store %arg4[%c0_9, %c0_10], %25 {strides = array<i32>} : memref<8x128xbf16, #tpu.memory_space<vmem>>, vector<8x128xbf16>,
    return
  }
  func.func @transform_0(%arg0: i32) -> (i32, i32) {
    %c0_i32 = arith.constant 0 : i32
    %c0_i32_0 = arith.constant 0 : i32
    return %arg0, %c0_i32 : i32, i32
  }
  func.func @transform_1(%arg0: i32) -> (i32, i32) {
    %c0_i32 = arith.constant 0 : i32
    %c0_i32_0 = arith.constant 0 : i32
    %c0_i32_1 = arith.constant 0 : i32
    return %c0_i32, %c0_i32_0 : i32, i32
  }
  func.func @transform_2(%arg0: i32) -> (i32, i32) {
    %c0_i32 = arith.constant 0 : i32
    %c0_i32_0 = arith.constant 0 : i32
    %c0_i32_1 = arith.constant 0 : i32
    return %c0_i32, %c0_i32_0 : i32, i32
  }
  func.func @transform_3(%arg0: i32) -> (i32, i32) {
    %c0_i32 = arith.constant 0 : i32
    %c0_i32_0 = arith.constant 0 : i32
    return %arg0, %c0_i32 : i32, i32
  }
}

module attributes {stable_mosaic.version = 11 : i64} {
  func.func @_head_kernel(%arg0: memref<2x128xbf16, #tpu.memory_space<vmem>>, %arg1: memref<2x5xf32, #tpu.memory_space<vmem>>, %arg2: memref<128x128xf32, #tpu.memory_space<vmem>>, %arg3: memref<1x128xf32, #tpu.memory_space<vmem>>, %arg4: memref<128x128xf32, #tpu.memory_space<vmem>>, %arg5: memref<1x128xf32, #tpu.memory_space<vmem>>, %arg6: memref<128x128xf32, #tpu.memory_space<vmem>>, %arg7: memref<5x128xf32, #tpu.memory_space<vmem>>, %arg8: memref<1x128xf32, #tpu.memory_space<vmem>>, %arg9: memref<128x1xf32, #tpu.memory_space<vmem>>, %arg10: memref<1x1xf32, #tpu.memory_space<vmem>>, %arg11: memref<2x1xf32, #tpu.memory_space<vmem>>) attributes {dimension_semantics = [], scalar_prefetch = 0 : i64, scratch_operands = 0 : i64, tpu.core_type = #tpu.core_type<tc>} {
    %c0 = arith.constant 0 : index
    %c0_0 = arith.constant 0 : index
    %0 = vector.load %arg0[%c0, %c0_0] : memref<2x128xbf16, #tpu.memory_space<vmem>>, vector<2x128xbf16>
    %1 = arith.extf %0 : vector<2x128xbf16> to vector<2x128xf32>
    %c0_1 = arith.constant 0 : index
    %c0_2 = arith.constant 0 : index
    %2 = vector.load %arg2[%c0_1, %c0_2] : memref<128x128xf32, #tpu.memory_space<vmem>>, vector<128x128xf32>
    %cst = arith.constant dense<0.000000e+00> : vector<2x128xf32>
    %3 = tpu.matmul %1, %2, %cst {dimension_numbers = #tpu.dot_dimension_numbers<[1], [0], [0], [1], [0, 0, 1, 1], [], []>} : vector<2x128xf32>, vector<128x128xf32>, vector<2x128xf32> -> vector<2x128xf32>
    %c0_3 = arith.constant 0 : index
    %c0_4 = arith.constant 0 : index
    %4 = vector.load %arg3[%c0_3, %c0_4] : memref<1x128xf32, #tpu.memory_space<vmem>>, vector<1x128xf32>
    %5 = vector.broadcast %4 : vector<1x128xf32> to vector<2x128xf32>
    %6 = arith.addf %3, %5 : vector<2x128xf32>
    %cst_5 = arith.constant 0.000000e+00 : f32
    %7 = vector.broadcast %cst_5 : f32 to vector<2x128xf32>
    %8 = arith.maximumf %6, %7 : vector<2x128xf32>
    %c0_6 = arith.constant 0 : index
    %c0_7 = arith.constant 0 : index
    %9 = vector.load %arg4[%c0_6, %c0_7] : memref<128x128xf32, #tpu.memory_space<vmem>>, vector<128x128xf32>
    %cst_8 = arith.constant dense<0.000000e+00> : vector<2x128xf32>
    %10 = tpu.matmul %8, %9, %cst_8 {dimension_numbers = #tpu.dot_dimension_numbers<[1], [0], [0], [1], [0, 0, 1, 1], [], []>} : vector<2x128xf32>, vector<128x128xf32>, vector<2x128xf32> -> vector<2x128xf32>
    %c0_9 = arith.constant 0 : index
    %c0_10 = arith.constant 0 : index
    %11 = vector.load %arg5[%c0_9, %c0_10] : memref<1x128xf32, #tpu.memory_space<vmem>>, vector<1x128xf32>
    %12 = vector.broadcast %11 : vector<1x128xf32> to vector<2x128xf32>
    %13 = arith.addf %10, %12 : vector<2x128xf32>
    %cst_11 = arith.constant 0.000000e+00 : f32
    %14 = vector.broadcast %cst_11 : f32 to vector<2x128xf32>
    %15 = arith.maximumf %13, %14 : vector<2x128xf32>
    %c0_12 = arith.constant 0 : index
    %c0_13 = arith.constant 0 : index
    %16 = vector.load %arg6[%c0_12, %c0_13] : memref<128x128xf32, #tpu.memory_space<vmem>>, vector<128x128xf32>
    %cst_14 = arith.constant dense<0.000000e+00> : vector<2x128xf32>
    %17 = tpu.matmul %15, %16, %cst_14 {dimension_numbers = #tpu.dot_dimension_numbers<[1], [0], [0], [1], [0, 0, 1, 1], [], []>} : vector<2x128xf32>, vector<128x128xf32>, vector<2x128xf32> -> vector<2x128xf32>
    %c0_15 = arith.constant 0 : index
    %c0_16 = arith.constant 0 : index
    %18 = vector.load %arg1[%c0_15, %c0_16] : memref<2x5xf32, #tpu.memory_space<vmem>>, vector<2x5xf32>
    %c0_17 = arith.constant 0 : index
    %c0_18 = arith.constant 0 : index
    %19 = vector.load %arg7[%c0_17, %c0_18] : memref<5x128xf32, #tpu.memory_space<vmem>>, vector<5x128xf32>
    %cst_19 = arith.constant dense<0.000000e+00> : vector<2x128xf32>
    %20 = tpu.matmul %18, %19, %cst_19 {dimension_numbers = #tpu.dot_dimension_numbers<[1], [0], [0], [1], [0, 0, 1, 1], [], []>} : vector<2x5xf32>, vector<5x128xf32>, vector<2x128xf32> -> vector<2x128xf32>
    %21 = arith.addf %17, %20 : vector<2x128xf32>
    %c0_20 = arith.constant 0 : index
    %c0_21 = arith.constant 0 : index
    %22 = vector.load %arg8[%c0_20, %c0_21] : memref<1x128xf32, #tpu.memory_space<vmem>>, vector<1x128xf32>
    %23 = vector.broadcast %22 : vector<1x128xf32> to vector<2x128xf32>
    %24 = arith.addf %21, %23 : vector<2x128xf32>
    %cst_22 = arith.constant 0.000000e+00 : f32
    %25 = vector.broadcast %cst_22 : f32 to vector<2x128xf32>
    %26 = arith.maximumf %24, %25 : vector<2x128xf32>
    %c0_23 = arith.constant 0 : index
    %c0_24 = arith.constant 0 : index
    %27 = vector.load %arg9[%c0_23, %c0_24] : memref<128x1xf32, #tpu.memory_space<vmem>>, vector<128x1xf32>
    %cst_25 = arith.constant dense<0.000000e+00> : vector<2x1xf32>
    %28 = tpu.matmul %26, %27, %cst_25 {dimension_numbers = #tpu.dot_dimension_numbers<[1], [0], [0], [1], [0, 0, 1, 1], [], []>} : vector<2x128xf32>, vector<128x1xf32>, vector<2x1xf32> -> vector<2x1xf32>
    %c0_26 = arith.constant 0 : index
    %c0_27 = arith.constant 0 : index
    %29 = vector.load %arg10[%c0_26, %c0_27] : memref<1x1xf32, #tpu.memory_space<vmem>>, vector<1x1xf32>
    %30 = vector.broadcast %29 : vector<1x1xf32> to vector<2x1xf32>
    %31 = arith.addf %28, %30 : vector<2x1xf32>
    %c0_28 = arith.constant 0 : index
    %c0_29 = arith.constant 0 : index
    %32 = vector.load %arg11[%c0_28, %c0_29] : memref<2x1xf32, #tpu.memory_space<vmem>>, vector<2x1xf32>
    tpu.vector_store %arg11[%c0_28, %c0_29], %31 {strides = array<i32>} : memref<2x1xf32, #tpu.memory_space<vmem>>, vector<2x1xf32>,
    return
  }
}

module attributes {stable_mosaic.version = 11 : i64} {
  func.func @_encoder_layer_kernel(%arg0: memref<2x8x128xbf16, #tpu.memory_space<vmem>>, %arg1: memref<2x1x8xf32, #tpu.memory_space<vmem>>, %arg2: memref<128x384xbf16, #tpu.memory_space<vmem>>, %arg3: memref<1x384xf32, #tpu.memory_space<vmem>>, %arg4: memref<128x128xbf16, #tpu.memory_space<vmem>>, %arg5: memref<1x128xf32, #tpu.memory_space<vmem>>, %arg6: memref<1x128xf32, #tpu.memory_space<vmem>>, %arg7: memref<1x128xf32, #tpu.memory_space<vmem>>, %arg8: memref<128x256xbf16, #tpu.memory_space<vmem>>, %arg9: memref<1x256xf32, #tpu.memory_space<vmem>>, %arg10: memref<256x128xbf16, #tpu.memory_space<vmem>>, %arg11: memref<1x128xf32, #tpu.memory_space<vmem>>, %arg12: memref<1x128xf32, #tpu.memory_space<vmem>>, %arg13: memref<1x128xf32, #tpu.memory_space<vmem>>, %arg14: memref<2x8x128xbf16, #tpu.memory_space<vmem>>) attributes {dimension_semantics = [], scalar_prefetch = 0 : i64, scratch_operands = 0 : i64, tpu.core_type = #tpu.core_type<tc>} {
    %c0 = arith.constant 0 : index
    %c0_0 = arith.constant 0 : index
    %c0_1 = arith.constant 0 : index
    %0 = vector.load %arg0[%c0, %c0_0, %c0_1] : memref<2x8x128xbf16, #tpu.memory_space<vmem>>, vector<2x8x128xbf16>
    %1 = vector.shape_cast %0 : vector<2x8x128xbf16> to vector<16x128xbf16>
    %2 = arith.extf %1 : vector<16x128xbf16> to vector<16x128xf32>
    %3 = vector.shape_cast %0 : vector<2x8x128xbf16> to vector<16x128xbf16>
    %c0_2 = arith.constant 0 : index
    %c0_3 = arith.constant 0 : index
    %4 = vector.load %arg2[%c0_2, %c0_3] : memref<128x384xbf16, #tpu.memory_space<vmem>>, vector<128x384xbf16>
    %cst = arith.constant dense<0.000000e+00> : vector<16x384xf32>
    %5 = tpu.matmul %3, %4, %cst {dimension_numbers = #tpu.dot_dimension_numbers<[1], [0], [0], [1], [0, 0, 1, 1], [], []>} : vector<16x128xbf16>, vector<128x384xbf16>, vector<16x384xf32> -> vector<16x384xf32>
    %c0_4 = arith.constant 0 : index
    %c0_5 = arith.constant 0 : index
    %6 = vector.load %arg3[%c0_4, %c0_5] : memref<1x384xf32, #tpu.memory_space<vmem>>, vector<1x384xf32>
    %7 = vector.broadcast %6 : vector<1x384xf32> to vector<16x384xf32>
    %8 = arith.addf %5, %7 : vector<16x384xf32>
    %9 = vector.extract_strided_slice %8 {offsets = [0, 0], sizes = [16, 128], strides = [1, 1]} : vector<16x384xf32> to vector<16x128xf32>
    %10 = vector.shape_cast %9 : vector<16x128xf32> to vector<2x8x128xf32>
    %11 = vector.extract_strided_slice %8 {offsets = [0, 128], sizes = [16, 128], strides = [1, 1]} : vector<16x384xf32> to vector<16x128xf32>
    %12 = vector.shape_cast %11 : vector<16x128xf32> to vector<2x8x128xf32>
    %13 = vector.extract_strided_slice %8 {offsets = [0, 256], sizes = [16, 128], strides = [1, 1]} : vector<16x384xf32> to vector<16x128xf32>
    %14 = vector.shape_cast %13 : vector<16x128xf32> to vector<2x8x128xf32>
    %c0_6 = arith.constant 0 : index
    %c0_7 = arith.constant 0 : index
    %c0_8 = arith.constant 0 : index
    %15 = vector.load %arg1[%c0_6, %c0_7, %c0_8] : memref<2x1x8xf32, #tpu.memory_space<vmem>>, vector<2x1x8xf32>
    %16 = vector.extract_strided_slice %10 {offsets = [0, 0, 0], sizes = [2, 8, 32], strides = [1, 1, 1]} : vector<2x8x128xf32> to vector<2x8x32xf32>
    %17 = arith.truncf %16 : vector<2x8x32xf32> to vector<2x8x32xbf16>
    %18 = vector.extract_strided_slice %12 {offsets = [0, 0, 0], sizes = [2, 8, 32], strides = [1, 1, 1]} : vector<2x8x128xf32> to vector<2x8x32xf32>
    %19 = arith.truncf %18 : vector<2x8x32xf32> to vector<2x8x32xbf16>
    %20 = vector.extract_strided_slice %14 {offsets = [0, 0, 0], sizes = [2, 8, 32], strides = [1, 1, 1]} : vector<2x8x128xf32> to vector<2x8x32xf32>
    %21 = arith.truncf %20 : vector<2x8x32xf32> to vector<2x8x32xbf16>
    "tpu.trace_start"() <{level = 10 : i32, message = "bqd,bkd->bqk"}> : () -> ()
    %cst_9 = arith.constant dense<0.000000e+00> : vector<2x8x8xf32>
    %22 = tpu.matmul %17, %19, %cst_9 {dimension_numbers = #tpu.dot_dimension_numbers<[2], [2], [1], [1], [0, 0, 0, 1, 1, 1], [0], [0]>} : vector<2x8x32xbf16>, vector<2x8x32xbf16>, vector<2x8x8xf32> -> vector<2x8x8xf32>
    "tpu.trace_stop"() : () -> ()
    %23 = vector.broadcast %15 : vector<2x1x8xf32> to vector<2x8x8xf32>
    %24 = arith.addf %22, %23 : vector<2x8x8xf32>
    %cst_10 = arith.constant dense<0xFF800000> : vector<2x8xf32>
    %25 = vector.multi_reduction <maximumf>, %24, %cst_10 [2] : vector<2x8x8xf32> to vector<2x8xf32>
    %26 = vector.shape_cast %25 : vector<2x8xf32> to vector<2x8x1xf32>
    %27 = vector.broadcast %26 : vector<2x8x1xf32> to vector<2x8x8xf32>
    %28 = arith.subf %24, %27 : vector<2x8x8xf32>
    %29 = math.exp %28 : vector<2x8x8xf32>
    %cst_11 = arith.constant dense<0.000000e+00> : vector<2x8xf32>
    %30 = vector.multi_reduction <add>, %29, %cst_11 [2] : vector<2x8x8xf32> to vector<2x8xf32>
    %31 = vector.shape_cast %30 : vector<2x8xf32> to vector<2x8x1xf32>
    %32 = tpu.reciprocal %31 {approx = true} : vector<2x8x1xf32> -> vector<2x8x1xf32>
    %33 = vector.broadcast %32 : vector<2x8x1xf32> to vector<2x8x8xf32>
    %34 = arith.mulf %29, %33 : vector<2x8x8xf32>
    %35 = arith.truncf %34 : vector<2x8x8xf32> to vector<2x8x8xbf16>
    "tpu.trace_start"() <{level = 10 : i32, message = "bqk,bkd->bqd"}> : () -> ()
    %cst_12 = arith.constant dense<0.000000e+00> : vector<2x8x32xf32>
    %36 = tpu.matmul %35, %21, %cst_12 {dimension_numbers = #tpu.dot_dimension_numbers<[2], [1], [1], [2], [0, 0, 0, 1, 1, 2], [0], [0]>} : vector<2x8x8xbf16>, vector<2x8x32xbf16>, vector<2x8x32xf32> -> vector<2x8x32xf32>
    "tpu.trace_stop"() : () -> ()
    %37 = vector.extract_strided_slice %10 {offsets = [0, 0, 32], sizes = [2, 8, 32], strides = [1, 1, 1]} : vector<2x8x128xf32> to vector<2x8x32xf32>
    %38 = arith.truncf %37 : vector<2x8x32xf32> to vector<2x8x32xbf16>
    %39 = vector.extract_strided_slice %12 {offsets = [0, 0, 32], sizes = [2, 8, 32], strides = [1, 1, 1]} : vector<2x8x128xf32> to vector<2x8x32xf32>
    %40 = arith.truncf %39 : vector<2x8x32xf32> to vector<2x8x32xbf16>
    %41 = vector.extract_strided_slice %14 {offsets = [0, 0, 32], sizes = [2, 8, 32], strides = [1, 1, 1]} : vector<2x8x128xf32> to vector<2x8x32xf32>
    %42 = arith.truncf %41 : vector<2x8x32xf32> to vector<2x8x32xbf16>
    "tpu.trace_start"() <{level = 10 : i32, message = "bqd,bkd->bqk"}> : () -> ()
    %cst_13 = arith.constant dense<0.000000e+00> : vector<2x8x8xf32>
    %43 = tpu.matmul %38, %40, %cst_13 {dimension_numbers = #tpu.dot_dimension_numbers<[2], [2], [1], [1], [0, 0, 0, 1, 1, 1], [0], [0]>} : vector<2x8x32xbf16>, vector<2x8x32xbf16>, vector<2x8x8xf32> -> vector<2x8x8xf32>
    "tpu.trace_stop"() : () -> ()
    %44 = vector.broadcast %15 : vector<2x1x8xf32> to vector<2x8x8xf32>
    %45 = arith.addf %43, %44 : vector<2x8x8xf32>
    %cst_14 = arith.constant dense<0xFF800000> : vector<2x8xf32>
    %46 = vector.multi_reduction <maximumf>, %45, %cst_14 [2] : vector<2x8x8xf32> to vector<2x8xf32>
    %47 = vector.shape_cast %46 : vector<2x8xf32> to vector<2x8x1xf32>
    %48 = vector.broadcast %47 : vector<2x8x1xf32> to vector<2x8x8xf32>
    %49 = arith.subf %45, %48 : vector<2x8x8xf32>
    %50 = math.exp %49 : vector<2x8x8xf32>
    %cst_15 = arith.constant dense<0.000000e+00> : vector<2x8xf32>
    %51 = vector.multi_reduction <add>, %50, %cst_15 [2] : vector<2x8x8xf32> to vector<2x8xf32>
    %52 = vector.shape_cast %51 : vector<2x8xf32> to vector<2x8x1xf32>
    %53 = tpu.reciprocal %52 {approx = true} : vector<2x8x1xf32> -> vector<2x8x1xf32>
    %54 = vector.broadcast %53 : vector<2x8x1xf32> to vector<2x8x8xf32>
    %55 = arith.mulf %50, %54 : vector<2x8x8xf32>
    %56 = arith.truncf %55 : vector<2x8x8xf32> to vector<2x8x8xbf16>
    "tpu.trace_start"() <{level = 10 : i32, message = "bqk,bkd->bqd"}> : () -> ()
    %cst_16 = arith.constant dense<0.000000e+00> : vector<2x8x32xf32>
    %57 = tpu.matmul %56, %42, %cst_16 {dimension_numbers = #tpu.dot_dimension_numbers<[2], [1], [1], [2], [0, 0, 0, 1, 1, 2], [0], [0]>} : vector<2x8x8xbf16>, vector<2x8x32xbf16>, vector<2x8x32xf32> -> vector<2x8x32xf32>
    "tpu.trace_stop"() : () -> ()
    %58 = vector.extract_strided_slice %10 {offsets = [0, 0, 64], sizes = [2, 8, 32], strides = [1, 1, 1]} : vector<2x8x128xf32> to vector<2x8x32xf32>
    %59 = arith.truncf %58 : vector<2x8x32xf32> to vector<2x8x32xbf16>
    %60 = vector.extract_strided_slice %12 {offsets = [0, 0, 64], sizes = [2, 8, 32], strides = [1, 1, 1]} : vector<2x8x128xf32> to vector<2x8x32xf32>
    %61 = arith.truncf %60 : vector<2x8x32xf32> to vector<2x8x32xbf16>
    %62 = vector.extract_strided_slice %14 {offsets = [0, 0, 64], sizes = [2, 8, 32], strides = [1, 1, 1]} : vector<2x8x128xf32> to vector<2x8x32xf32>
    %63 = arith.truncf %62 : vector<2x8x32xf32> to vector<2x8x32xbf16>
    "tpu.trace_start"() <{level = 10 : i32, message = "bqd,bkd->bqk"}> : () -> ()
    %cst_17 = arith.constant dense<0.000000e+00> : vector<2x8x8xf32>
    %64 = tpu.matmul %59, %61, %cst_17 {dimension_numbers = #tpu.dot_dimension_numbers<[2], [2], [1], [1], [0, 0, 0, 1, 1, 1], [0], [0]>} : vector<2x8x32xbf16>, vector<2x8x32xbf16>, vector<2x8x8xf32> -> vector<2x8x8xf32>
    "tpu.trace_stop"() : () -> ()
    %65 = vector.broadcast %15 : vector<2x1x8xf32> to vector<2x8x8xf32>
    %66 = arith.addf %64, %65 : vector<2x8x8xf32>
    %cst_18 = arith.constant dense<0xFF800000> : vector<2x8xf32>
    %67 = vector.multi_reduction <maximumf>, %66, %cst_18 [2] : vector<2x8x8xf32> to vector<2x8xf32>
    %68 = vector.shape_cast %67 : vector<2x8xf32> to vector<2x8x1xf32>
    %69 = vector.broadcast %68 : vector<2x8x1xf32> to vector<2x8x8xf32>
    %70 = arith.subf %66, %69 : vector<2x8x8xf32>
    %71 = math.exp %70 : vector<2x8x8xf32>
    %cst_19 = arith.constant dense<0.000000e+00> : vector<2x8xf32>
    %72 = vector.multi_reduction <add>, %71, %cst_19 [2] : vector<2x8x8xf32> to vector<2x8xf32>
    %73 = vector.shape_cast %72 : vector<2x8xf32> to vector<2x8x1xf32>
    %74 = tpu.reciprocal %73 {approx = true} : vector<2x8x1xf32> -> vector<2x8x1xf32>
    %75 = vector.broadcast %74 : vector<2x8x1xf32> to vector<2x8x8xf32>
    %76 = arith.mulf %71, %75 : vector<2x8x8xf32>
    %77 = arith.truncf %76 : vector<2x8x8xf32> to vector<2x8x8xbf16>
    "tpu.trace_start"() <{level = 10 : i32, message = "bqk,bkd->bqd"}> : () -> ()
    %cst_20 = arith.constant dense<0.000000e+00> : vector<2x8x32xf32>
    %78 = tpu.matmul %77, %63, %cst_20 {dimension_numbers = #tpu.dot_dimension_numbers<[2], [1], [1], [2], [0, 0, 0, 1, 1, 2], [0], [0]>} : vector<2x8x8xbf16>, vector<2x8x32xbf16>, vector<2x8x32xf32> -> vector<2x8x32xf32>
    "tpu.trace_stop"() : () -> ()
    %79 = vector.extract_strided_slice %10 {offsets = [0, 0, 96], sizes = [2, 8, 32], strides = [1, 1, 1]} : vector<2x8x128xf32> to vector<2x8x32xf32>
    %80 = arith.truncf %79 : vector<2x8x32xf32> to vector<2x8x32xbf16>
    %81 = vector.extract_strided_slice %12 {offsets = [0, 0, 96], sizes = [2, 8, 32], strides = [1, 1, 1]} : vector<2x8x128xf32> to vector<2x8x32xf32>
    %82 = arith.truncf %81 : vector<2x8x32xf32> to vector<2x8x32xbf16>
    %83 = vector.extract_strided_slice %14 {offsets = [0, 0, 96], sizes = [2, 8, 32], strides = [1, 1, 1]} : vector<2x8x128xf32> to vector<2x8x32xf32>
    %84 = arith.truncf %83 : vector<2x8x32xf32> to vector<2x8x32xbf16>
    "tpu.trace_start"() <{level = 10 : i32, message = "bqd,bkd->bqk"}> : () -> ()
    %cst_21 = arith.constant dense<0.000000e+00> : vector<2x8x8xf32>
    %85 = tpu.matmul %80, %82, %cst_21 {dimension_numbers = #tpu.dot_dimension_numbers<[2], [2], [1], [1], [0, 0, 0, 1, 1, 1], [0], [0]>} : vector<2x8x32xbf16>, vector<2x8x32xbf16>, vector<2x8x8xf32> -> vector<2x8x8xf32>
    "tpu.trace_stop"() : () -> ()
    %86 = vector.broadcast %15 : vector<2x1x8xf32> to vector<2x8x8xf32>
    %87 = arith.addf %85, %86 : vector<2x8x8xf32>
    %cst_22 = arith.constant dense<0xFF800000> : vector<2x8xf32>
    %88 = vector.multi_reduction <maximumf>, %87, %cst_22 [2] : vector<2x8x8xf32> to vector<2x8xf32>
    %89 = vector.shape_cast %88 : vector<2x8xf32> to vector<2x8x1xf32>
    %90 = vector.broadcast %89 : vector<2x8x1xf32> to vector<2x8x8xf32>
    %91 = arith.subf %87, %90 : vector<2x8x8xf32>
    %92 = math.exp %91 : vector<2x8x8xf32>
    %cst_23 = arith.constant dense<0.000000e+00> : vector<2x8xf32>
    %93 = vector.multi_reduction <add>, %92, %cst_23 [2] : vector<2x8x8xf32> to vector<2x8xf32>
    %94 = vector.shape_cast %93 : vector<2x8xf32> to vector<2x8x1xf32>
    %95 = tpu.reciprocal %94 {approx = true} : vector<2x8x1xf32> -> vector<2x8x1xf32>
    %96 = vector.broadcast %95 : vector<2x8x1xf32> to vector<2x8x8xf32>
    %97 = arith.mulf %92, %96 : vector<2x8x8xf32>
    %98 = arith.truncf %97 : vector<2x8x8xf32> to vector<2x8x8xbf16>
    "tpu.trace_start"() <{level = 10 : i32, message = "bqk,bkd->bqd"}> : () -> ()
    %cst_24 = arith.constant dense<0.000000e+00> : vector<2x8x32xf32>
    %99 = tpu.matmul %98, %84, %cst_24 {dimension_numbers = #tpu.dot_dimension_numbers<[2], [1], [1], [2], [0, 0, 0, 1, 1, 2], [0], [0]>} : vector<2x8x8xbf16>, vector<2x8x32xbf16>, vector<2x8x32xf32> -> vector<2x8x32xf32>
    "tpu.trace_stop"() : () -> ()
    %100 = tpu.concatenate %36, %57, %78, %99 in 2 : vector<2x8x32xf32>, vector<2x8x32xf32>, vector<2x8x32xf32>, vector<2x8x32xf32> -> vector<2x8x128xf32>
    %101 = vector.shape_cast %100 : vector<2x8x128xf32> to vector<16x128xf32>
    %102 = arith.truncf %101 : vector<16x128xf32> to vector<16x128xbf16>
    %c0_25 = arith.constant 0 : index
    %c0_26 = arith.constant 0 : index
    %103 = vector.load %arg4[%c0_25, %c0_26] : memref<128x128xbf16, #tpu.memory_space<vmem>>, vector<128x128xbf16>
    %cst_27 = arith.constant dense<0.000000e+00> : vector<16x128xf32>
    %104 = tpu.matmul %102, %103, %cst_27 {dimension_numbers = #tpu.dot_dimension_numbers<[1], [0], [0], [1], [0, 0, 1, 1], [], []>} : vector<16x128xbf16>, vector<128x128xbf16>, vector<16x128xf32> -> vector<16x128xf32>
    %c0_28 = arith.constant 0 : index
    %c0_29 = arith.constant 0 : index
    %105 = vector.load %arg5[%c0_28, %c0_29] : memref<1x128xf32, #tpu.memory_space<vmem>>, vector<1x128xf32>
    %106 = vector.broadcast %105 : vector<1x128xf32> to vector<16x128xf32>
    %107 = arith.addf %104, %106 : vector<16x128xf32>
    %108 = arith.addf %2, %107 : vector<16x128xf32>
    %c0_30 = arith.constant 0 : index
    %c0_31 = arith.constant 0 : index
    %109 = vector.load %arg6[%c0_30, %c0_31] : memref<1x128xf32, #tpu.memory_space<vmem>>, vector<1x128xf32>
    %c0_32 = arith.constant 0 : index
    %c0_33 = arith.constant 0 : index
    %110 = vector.load %arg7[%c0_32, %c0_33] : memref<1x128xf32, #tpu.memory_space<vmem>>, vector<1x128xf32>
    %cst_34 = arith.constant dense<0.000000e+00> : vector<16xf32>
    %111 = vector.multi_reduction <add>, %108, %cst_34 [1] : vector<16x128xf32> to vector<16xf32>
    %112 = vector.shape_cast %111 : vector<16xf32> to vector<16x1xf32>
    %cst_35 = arith.constant 1.280000e+02 : f32
    %113 = vector.broadcast %cst_35 : f32 to vector<16x1xf32>
    %114 = arith.divf %112, %113 : vector<16x1xf32>
    %115 = vector.broadcast %114 : vector<16x1xf32> to vector<16x128xf32>
    %116 = arith.subf %108, %115 : vector<16x128xf32>
    %117 = arith.mulf %116, %116 : vector<16x128xf32>
    %cst_36 = arith.constant dense<0.000000e+00> : vector<16xf32>
    %118 = vector.multi_reduction <add>, %117, %cst_36 [1] : vector<16x128xf32> to vector<16xf32>
    %119 = vector.shape_cast %118 : vector<16xf32> to vector<16x1xf32>
    %cst_37 = arith.constant 1.280000e+02 : f32
    %120 = vector.broadcast %cst_37 : f32 to vector<16x1xf32>
    %121 = arith.divf %119, %120 : vector<16x1xf32>
    %122 = vector.broadcast %114 : vector<16x1xf32> to vector<16x128xf32>
    %123 = arith.subf %108, %122 : vector<16x128xf32>
    %cst_38 = arith.constant 9.99999974E-6 : f32
    %124 = vector.broadcast %cst_38 : f32 to vector<16x1xf32>
    %125 = arith.addf %121, %124 : vector<16x1xf32>
    %126 = math.rsqrt %125 : vector<16x1xf32>
    %127 = vector.broadcast %126 : vector<16x1xf32> to vector<16x128xf32>
    %128 = arith.mulf %123, %127 : vector<16x128xf32>
    %129 = vector.broadcast %109 : vector<1x128xf32> to vector<16x128xf32>
    %130 = arith.mulf %128, %129 : vector<16x128xf32>
    %131 = vector.broadcast %110 : vector<1x128xf32> to vector<16x128xf32>
    %132 = arith.addf %130, %131 : vector<16x128xf32>
    %133 = arith.truncf %132 : vector<16x128xf32> to vector<16x128xbf16>
    %c0_39 = arith.constant 0 : index
    %c0_40 = arith.constant 0 : index
    %134 = vector.load %arg8[%c0_39, %c0_40] : memref<128x256xbf16, #tpu.memory_space<vmem>>, vector<128x256xbf16>
    %cst_41 = arith.constant dense<0.000000e+00> : vector<16x256xf32>
    %135 = tpu.matmul %133, %134, %cst_41 {dimension_numbers = #tpu.dot_dimension_numbers<[1], [0], [0], [1], [0, 0, 1, 1], [], []>} : vector<16x128xbf16>, vector<128x256xbf16>, vector<16x256xf32> -> vector<16x256xf32>
    %c0_42 = arith.constant 0 : index
    %c0_43 = arith.constant 0 : index
    %136 = vector.load %arg9[%c0_42, %c0_43] : memref<1x256xf32, #tpu.memory_space<vmem>>, vector<1x256xf32>
    %137 = vector.broadcast %136 : vector<1x256xf32> to vector<16x256xf32>
    %138 = arith.addf %135, %137 : vector<16x256xf32>
    %139 = arith.mulf %138, %138 : vector<16x256xf32>
    %140 = arith.mulf %138, %139 : vector<16x256xf32>
    %cst_44 = arith.constant 4.471500e-02 : f32
    %141 = vector.broadcast %cst_44 : f32 to vector<16x256xf32>
    %142 = arith.mulf %141, %140 : vector<16x256xf32>
    %143 = arith.addf %138, %142 : vector<16x256xf32>
    %cst_45 = arith.constant 0.797884583 : f32
    %144 = vector.broadcast %cst_45 : f32 to vector<16x256xf32>
    %145 = arith.mulf %144, %143 : vector<16x256xf32>
    %146 = math.tanh %145 : vector<16x256xf32>
    %cst_46 = arith.constant 1.000000e+00 : f32
    %147 = vector.broadcast %cst_46 : f32 to vector<16x256xf32>
    %148 = arith.addf %147, %146 : vector<16x256xf32>
    %cst_47 = arith.constant 5.000000e-01 : f32
    %149 = vector.broadcast %cst_47 : f32 to vector<16x256xf32>
    %150 = arith.mulf %149, %148 : vector<16x256xf32>
    %151 = arith.mulf %138, %150 : vector<16x256xf32>
    %152 = arith.truncf %151 : vector<16x256xf32> to vector<16x256xbf16>
    %c0_48 = arith.constant 0 : index
    %c0_49 = arith.constant 0 : index
    %153 = vector.load %arg10[%c0_48, %c0_49] : memref<256x128xbf16, #tpu.memory_space<vmem>>, vector<256x128xbf16>
    %cst_50 = arith.constant dense<0.000000e+00> : vector<16x128xf32>
    %154 = tpu.matmul %152, %153, %cst_50 {dimension_numbers = #tpu.dot_dimension_numbers<[1], [0], [0], [1], [0, 0, 1, 1], [], []>} : vector<16x256xbf16>, vector<256x128xbf16>, vector<16x128xf32> -> vector<16x128xf32>
    %c0_51 = arith.constant 0 : index
    %c0_52 = arith.constant 0 : index
    %155 = vector.load %arg11[%c0_51, %c0_52] : memref<1x128xf32, #tpu.memory_space<vmem>>, vector<1x128xf32>
    %156 = vector.broadcast %155 : vector<1x128xf32> to vector<16x128xf32>
    %157 = arith.addf %154, %156 : vector<16x128xf32>
    %158 = arith.addf %132, %157 : vector<16x128xf32>
    %c0_53 = arith.constant 0 : index
    %c0_54 = arith.constant 0 : index
    %159 = vector.load %arg12[%c0_53, %c0_54] : memref<1x128xf32, #tpu.memory_space<vmem>>, vector<1x128xf32>
    %c0_55 = arith.constant 0 : index
    %c0_56 = arith.constant 0 : index
    %160 = vector.load %arg13[%c0_55, %c0_56] : memref<1x128xf32, #tpu.memory_space<vmem>>, vector<1x128xf32>
    %cst_57 = arith.constant dense<0.000000e+00> : vector<16xf32>
    %161 = vector.multi_reduction <add>, %158, %cst_57 [1] : vector<16x128xf32> to vector<16xf32>
    %162 = vector.shape_cast %161 : vector<16xf32> to vector<16x1xf32>
    %cst_58 = arith.constant 1.280000e+02 : f32
    %163 = vector.broadcast %cst_58 : f32 to vector<16x1xf32>
    %164 = arith.divf %162, %163 : vector<16x1xf32>
    %165 = vector.broadcast %164 : vector<16x1xf32> to vector<16x128xf32>
    %166 = arith.subf %158, %165 : vector<16x128xf32>
    %167 = arith.mulf %166, %166 : vector<16x128xf32>
    %cst_59 = arith.constant dense<0.000000e+00> : vector<16xf32>
    %168 = vector.multi_reduction <add>, %167, %cst_59 [1] : vector<16x128xf32> to vector<16xf32>
    %169 = vector.shape_cast %168 : vector<16xf32> to vector<16x1xf32>
    %cst_60 = arith.constant 1.280000e+02 : f32
    %170 = vector.broadcast %cst_60 : f32 to vector<16x1xf32>
    %171 = arith.divf %169, %170 : vector<16x1xf32>
    %172 = vector.broadcast %164 : vector<16x1xf32> to vector<16x128xf32>
    %173 = arith.subf %158, %172 : vector<16x128xf32>
    %cst_61 = arith.constant 9.99999974E-6 : f32
    %174 = vector.broadcast %cst_61 : f32 to vector<16x1xf32>
    %175 = arith.addf %171, %174 : vector<16x1xf32>
    %176 = math.rsqrt %175 : vector<16x1xf32>
    %177 = vector.broadcast %176 : vector<16x1xf32> to vector<16x128xf32>
    %178 = arith.mulf %173, %177 : vector<16x128xf32>
    %179 = vector.broadcast %159 : vector<1x128xf32> to vector<16x128xf32>
    %180 = arith.mulf %178, %179 : vector<16x128xf32>
    %181 = vector.broadcast %160 : vector<1x128xf32> to vector<16x128xf32>
    %182 = arith.addf %180, %181 : vector<16x128xf32>
    %183 = vector.shape_cast %182 : vector<16x128xf32> to vector<2x8x128xf32>
    %184 = arith.truncf %183 : vector<2x8x128xf32> to vector<2x8x128xbf16>
    %c0_62 = arith.constant 0 : index
    %c0_63 = arith.constant 0 : index
    %c0_64 = arith.constant 0 : index
    %185 = vector.load %arg14[%c0_62, %c0_63, %c0_64] : memref<2x8x128xbf16, #tpu.memory_space<vmem>>, vector<2x8x128xbf16>
    tpu.vector_store %arg14[%c0_62, %c0_63, %c0_64], %184 {strides = array<i32>} : memref<2x8x128xbf16, #tpu.memory_space<vmem>>, vector<2x8x128xbf16>,
    return
  }
}

</mosaic_0001>

<bundles_post_ra>
// kernel: roberta_class_forward.4
= control target key start
LH: loop header
LB: loop body
LE: loop exit
PB: predicated region body
PF: predicated region fallthrough
CT: control target
= control target key end

     0   :  { %s299_s12 = smov 0   ;;  %s322_s0 = inlined_call_operand.vmem [shape: f32[16,128], index: 0, kind: input, shape index: {}]   ;;  %s323_s1 = inlined_call_operand.vmem [shape: f32[1,128], index: 1, kind: input, shape index: {}]   ;;  %s324_s2 = inlined_call_operand.vmem [shape: f32[1,128], index: 2, kind: input, shape index: {}]   ;;  %s325_s3 = inlined_call_operand.vmem [shape: bf16[16,128], index: 3, kind: output, shape index: {}]  }
   0x1 LB: > { %s250_s13 = sadd.s32 4294967295, %s277_s12   ;;  %p254_p0 = scmp.ge.s32.totalorder %s277_s12, 1  ;;  %s277_s12 = sphi %s299_s12, %s13_s12  }
   0x2   : > { %p136_p1 = scmp.lt.s32.totalorder %s277_s12, 3 }
   0x4   : > { %p137_p2 = pnand %p254_p0, %p136_p1 }
   0x5   : > { %p158_p3 = scmp.lt.s32.totalorder (!%p137_p2), %s250_s13, 1  ;;  %v257_v9 = vld [vmem:[%s323_s1] ss:$0 sm:$0xff] (!%p137_p2) }
   0x6   : > { %140 = sbr.rel (%p137_p2) target bundleno = 331 (0x14b), region = 32  ;;  %v258_v11 = vld [vmem:[%s324_s2] ss:$0 sm:$0xff] (!%p137_p2) }
   0xd   : > { %s327_s13 = smov (!%p158_p3, %s250_s13), 1 }
   0xe   : > { %s255_s14 = sshll.u32 %s327_s13, 3  ;;  %s256_s22 = sshll.u32 %s327_s13, 2 }
   0xf   : > { %s161_s17 = scalar_lea.vmem %s322_s0, %s255_s14  ;;  %s165_s25 = scalar_lea.vmem %s325_s3, %s256_s22 }
  0x10   : > { %v166_v0 = vld [vmem:[%s161_s17] sm:$0xff] }
  0x11   : > { %169 = vadd.xlane.f32.xlu0 %v166_v0 }
  0x9e   : > { %v170_v1 = vpop.xlane.xlu0 %169 }
  0x9f   : > { %v172_v2 = vmul.f32 0.0078125, %v170_v1 }
  0xa1   : > { %v173_v3 = vsub.f32 %v166_v0, %v172_v2 }
  0xa3   : > { %v174_v4 = vmul.f32 %v173_v3, %v173_v3 }
  0xa5   : > { %175 = vadd.xlane.f32.xlu0 %v174_v4 }
 0x132   : > { %v176_v5 = vpop.xlane.xlu0 %175 }
 0x133   : > { %v177_v6 = vmul.f32 0.0078125, %v176_v5 }
 0x135   : > { %v178_v7 = vadd.f32 1e-05, %v177_v6 }
 0x137   : > { %269 = vrsqrt.f32 %v178_v7 }
 0x141   : > { %v270_v8 = vpop.eup %269 }
 0x142   : > { %v180_v10 = vmul.f32 %v270_v8, %v173_v3 }
 0x144   : > { %v187_v12 = vmul.f32 %v257_v9, %v180_v10 }
 0x146   : > { %v194_v13 = vadd.f32 %v258_v11, %v187_v12 }
 0x148   : > { %v195_v14 = vpack.c.bf16 %v194_v13, %v194_v13 }
 0x14a   : > { %196 = vst [vmem:[%s165_s25] sm:$0xf] %v195_v14 }
 0x14b PF: > { %s13_s12 = sadd.s32 1, %s277_s12  }
 0x14c   : > { %p10_p4 = scmp.ge.s32.totalorder %s13_s12, 4  }
 0x14e   :  { %12 = sbr.rel (!%p10_p4) target bundleno = 1 (0x1), region = 62 }

// kernel: roberta_class_forward.7
= control target key start
LH: loop header
LB: loop body
LE: loop exit
PB: predicated region body
PF: predicated region fallthrough
CT: control target
= control target key end

     0   :  { %v824_v0 = vmov 0.0|0.0   ;;  %vm825_vm0 = vmmov 0   ;;  %v826_v4 = vmov 0.0   ;;  %vm252_vm1 = vcmask 1044480   ;;  %s1146_s2 = inlined_call_operand.vmem [shape: f32[128,128], index: 2, kind: input, shape index: {}]   ;;  %s1147_s4 = inlined_call_operand.vmem [shape: f32[128,128], index: 4, kind: input, shape index: {}]   ;;  %s1148_s0 = inlined_call_operand.vmem [shape: bf16[2,128], index: 0, kind: input, shape index: {}]   ;;  %s1149_s3 = inlined_call_operand.vmem [shape: f32[1,128], index: 3, kind: input, shape index: {}]   ;;  %s1150_s6 = inlined_call_operand.vmem [shape: f32[128,128], index: 6, kind: input, shape index: {}]   ;;  %s1151_s7 = inlined_call_operand.vmem [shape: f32[5,128], index: 7, kind: input, shape index: {}]   ;;  %s1152_s1 = inlined_call_operand.vmem [shape: f32[2,5], index: 1, kind: input, shape index: {}]   ;;  %s1153_s9 = inlined_call_operand.vmem [shape: f32[128,1], index: 9, kind: input, shape index: {}]   ;;  %s1154_s5 = inlined_call_operand.vmem [shape: f32[1,128], index: 5, kind: input, shape index: {}]   ;;  %s1155_s10 = inlined_call_operand.<no memory space> [shape: f32[1,1], index: 10, kind: input, shape index: {}]   ;;  %s1156_s8 = inlined_call_operand.vmem [shape: f32[1,128], index: 8, kind: input, shape index: {}]   ;;  %s1157_s11 = inlined_call_operand.vmem [shape: f32[2,1], index: 11, kind: output, shape index: {}]  }
   0x1   :  { %725 = vmatprep.subr.bf16.mxu0 %v824_v0  ;;  %v42_v1 = vld [vmem:[%s1146_s2] sm:$0xff]  ;;  %v43_v2 = vld [vmem:[%s1146_s2 + $0x8] sm:$0xff]  ;;  %v44_v3 = vld [vmem:[%s1146_s2 + $0x10] sm:$0xff]  ;;  %612 = vmatprep.mubr.msk.f32.mxu0 %vm825_vm0, %v826_v4  ;;  %vm248_vm2 = vcmask 39936   ;;  %vm498_vm3 = vcmask 1024  }
   0x2   :  { %v726_v5 = vpack.c.bf16 %v43_v2, %v42_v1  ;;  %v45_v6 = vld [vmem:[%s1146_s2 + $0x18] sm:$0xff]  ;;  %749 = vmatprep.subr.bf16.mxu1 %v824_v0  ;;  %647 = vmatprep.mubr.msk.f32.mxu1 %vm825_vm0, %v826_v4  ;;  %v46_v8 = vld [vmem:[%s1146_s2 + $0x20] sm:$0xff]  ;;  %v47_v9 = vld [vmem:[%s1146_s2 + $0x28] sm:$0xff] }
   0x3   :  { %v729_v7 = vpack.c.bf16 %v45_v6, %v44_v3  ;;  %v136_v10 = vld [vmem:[%s1147_s4] sm:$0xff]  ;;  %v137_v11 = vld [vmem:[%s1147_s4 + $0x8] sm:$0xff]  ;;  %v138_v12 = vld [vmem:[%s1147_s4 + $0x10] sm:$0xff]  ;;  %v732_v14 = vpack.c.bf16 %v47_v9, %v46_v8 }
   0x4   :  { %727 = vmatpush3.bf16.msra.mxu0 %v726_v5  ;;  %v139_v13 = vld [vmem:[%s1147_s4 + $0x18] sm:$0xff]  ;;  %v750_v15 = vpack.c.bf16 %v137_v11, %v136_v10  ;;  %v48_v16 = vld [vmem:[%s1146_s2 + $0x30] sm:$0xff]  ;;  %v140_v19 = vld [vmem:[%s1147_s4 + $0x20] sm:$0xff] }
   0x5   :  { %728 = vmatprep.subr.bf16.mxu0 %v824_v0  ;;  %v49_v17 = vld [vmem:[%s1146_s2 + $0x38] sm:$0xff]  ;;  %v753_v18 = vpack.c.bf16 %v139_v13, %v138_v12  ;;  %v141_v20 = vld [vmem:[%s1147_s4 + $0x28] sm:$0xff]  ;;  %v50_v22 = vld [vmem:[%s1146_s2 + $0x40] sm:$0xff] }
   0x6   :  { %751 = vmatpush3.bf16.msra.mxu1 %v750_v15  ;;  %v735_v21 = vpack.c.bf16 %v49_v17, %v48_v16  ;;  %v51_v23 = vld [vmem:[%s1146_s2 + $0x48] sm:$0xff]  ;;  %v756_v24 = vpack.c.bf16 %v141_v20, %v140_v19  ;;  %v142_v25 = vld [vmem:[%s1147_s4 + $0x30] sm:$0xff]  ;;  %v143_v26 = vld [vmem:[%s1147_s4 + $0x38] sm:$0xff] }
   0x7   :  { %752 = vmatprep.subr.bf16.mxu1 %v824_v0  ;;  %v738_v27 = vpack.c.bf16 %v51_v23, %v50_v22  ;;  %v52_v28 = vld [vmem:[%s1146_s2 + $0x50] sm:$0xff]  ;;  %v53_v29 = vld [vmem:[%s1146_s2 + $0x58] sm:$0xff]  ;;  %v759_v30 = vpack.c.bf16 %v143_v26, %v142_v25  ;;  %v144_v31 = vld [vmem:[%s1147_s4 + $0x40] sm:$0xff] }
   0x8   :  { %730 = vmatpush3.bf16.msra.mxu0 %v729_v7  ;;  %v145_v32 = vld [vmem:[%s1147_s4 + $0x48] sm:$0xff]  ;;  %v741_v33 = vpack.c.bf16 %v53_v29, %v52_v28  ;;  %v54_v34 = vld [vmem:[%s1146_s2 + $0x60] sm:$0xff]  ;;  %v146_v37 = vld [vmem:[%s1147_s4 + $0x50] sm:$0xff] }
   0x9   :  { %731 = vmatprep.subr.bf16.mxu0 %v824_v0  ;;  %v55_v35 = vld [vmem:[%s1146_s2 + $0x68] sm:$0xff]  ;;  %v762_v36 = vpack.c.bf16 %v145_v32, %v144_v31  ;;  %v147_v38 = vld [vmem:[%s1147_s4 + $0x58] sm:$0xff]  ;;  %v56_v40 = vld [vmem:[%s1146_s2 + $0x70] sm:$0xff] }
   0xa   :  { %754 = vmatpush3.bf16.msra.mxu1 %v753_v18  ;;  %v744_v39 = vpack.c.bf16 %v55_v35, %v54_v34  ;;  %v57_v41 = vld [vmem:[%s1146_s2 + $0x78] sm:$0xff]  ;;  %v765_v42 = vpack.c.bf16 %v147_v38, %v146_v37  ;;  %v148_v43 = vld [vmem:[%s1147_s4 + $0x60] sm:$0xff]  ;;  %v149_v44 = vld [vmem:[%s1147_s4 + $0x68] sm:$0xff] }
   0xb   :  { %755 = vmatprep.subr.bf16.mxu1 %v824_v0  ;;  %v747_v45 = vpack.c.bf16 %v57_v41, %v56_v40  ;;  %v40_v46 = vld [vmem:[%s1148_s0] sm:$0x1]  ;;  %v768_v47 = vpack.c.bf16 %v149_v44, %v148_v43  ;;  %v150_v49 = vld [vmem:[%s1147_s4 + $0x70] sm:$0xff]  ;;  %v151_v50 = vld [vmem:[%s1147_s4 + $0x78] sm:$0xff] }
   0xc   :  { %733 = vmatpush3.bf16.msra.mxu0 %v732_v14  ;;  %v41_v48 = vunpack.c.l.bf16 %v40_v46  ;;  %v771_v51 = vpack.c.bf16 %v151_v50, %v150_v49  ;;  %v504_v52 = vld [vmem:[%s1149_s3] ss:$0 sm:$0xff]  ;;  %v231_v54 = vld [vmem:[%s1150_s6 + $0x8] sm:$0xff]  ;;  %v232_v60 = vld [vmem:[%s1150_s6 + $0x10] sm:$0xff] }
   0xd   :  { %734 = vmatprep.subr.bf16.mxu0 %v824_v0  ;;  %v230_v53 = vld [vmem:[%s1150_s6] sm:$0xff]  ;;  %v233_v61 = vld [vmem:[%s1150_s6 + $0x18] sm:$0xff]  ;;  %v235_v1 = vld [vmem:[%s1150_s6 + $0x28] sm:$0xff] }
   0xe   :  { %757 = vmatpush3.bf16.msra.mxu1 %v756_v24  ;;  %v774_v58 = vpack.c.bf16 %v231_v54, %v230_v53  ;;  %v777_v62 = vpack.c.bf16 %v233_v61, %v232_v60  ;;  %v234_v63 = vld [vmem:[%s1150_s6 + $0x20] sm:$0xff]  ;;  %v236_v3 = vld [vmem:[%s1150_s6 + $0x30] sm:$0xff]  ;;  %v237_v5 = vld [vmem:[%s1150_s6 + $0x38] sm:$0xff] }
   0xf   :  { %758 = vmatprep.subr.bf16.mxu1 %v824_v0  ;;  %v780_v2 = vpack.c.bf16 %v235_v1, %v234_v63  ;;  %v783_v6 = vpack.c.bf16 %v237_v5, %v236_v3  ;;  %v238_v7 = vld [vmem:[%s1150_s6 + $0x40] sm:$0xff]  ;;  %v239_v8 = vld [vmem:[%s1150_s6 + $0x48] sm:$0xff]  ;;  %v240_v10 = vld [vmem:[%s1150_s6 + $0x50] sm:$0xff] }
  0x10   :  { %736 = vmatpush3.bf16.msra.mxu0 %v735_v21  ;;  %v786_v9 = vpack.c.bf16 %v239_v8, %v238_v7  ;;  %v241_v11 = vld [vmem:[%s1150_s6 + $0x58] sm:$0xff]  ;;  %v242_v13 = vld [vmem:[%s1150_s6 + $0x60] sm:$0xff]  ;;  %v243_v14 = vld [vmem:[%s1150_s6 + $0x68] sm:$0xff] }
  0x11   :  { %737 = vmatprep.subr.bf16.mxu0 %v824_v0  ;;  %v789_v12 = vpack.c.bf16 %v241_v11, %v240_v10  ;;  %v792_v15 = vpack.c.bf16 %v243_v14, %v242_v13  ;;  %v244_v16 = vld [vmem:[%s1150_s6 + $0x70] sm:$0xff]  ;;  %v245_v17 = vld [vmem:[%s1150_s6 + $0x78] sm:$0xff]  ;;  %v247_v19 = vld [vmem:[%s1151_s7] sm:$0x1f] }
  0x12   :  { %760 = vmatpush3.bf16.msra.mxu1 %v759_v30  ;;  %v795_v18 = vpack.c.bf16 %v245_v17, %v244_v16  ;;  %v246_v20 = vld [vmem:[%s1152_s1] sm:$0x3]  ;;  %v406_v22 = vld [vmem:[%s1153_s9 + $0x8] sm:$0xff]  ;;  %v407_v23 = vld [vmem:[%s1153_s9 + $0x10] sm:$0xff] }
  0x13   :  { %761 = vmatprep.subr.bf16.mxu1 %v824_v0  ;;  %v405_v21 = vld [vmem:[%s1153_s9] sm:$0xff]  ;;  %v408_v25 = vld [vmem:[%s1153_s9 + $0x18] sm:$0xff]  ;;  %v411_v29 = vld [vmem:[%s1153_s9 + $0x30] sm:$0xff] }
  0x14   :  { %739 = vmatpush3.bf16.msra.mxu0 %v738_v27  ;;  %v798_v24 = vpack.c.bf16 %v406_v22, %v405_v21  ;;  %v801_v26 = vpack.c.bf16 %v408_v25, %v407_v23  ;;  %v410_v27 = vld [vmem:[%s1153_s9 + $0x28] sm:$0xff]  ;;  %v412_v30 = vld [vmem:[%s1153_s9 + $0x38] sm:$0xff]  ;;  %v413_v32 = vld [vmem:[%s1153_s9 + $0x40] sm:$0xff] }
  0x15   :  { %740 = vmatprep.subr.bf16.mxu0 %v824_v0  ;;  %v807_v31 = vpack.c.bf16 %v412_v30, %v411_v29  ;;  %v415_v35 = vld [vmem:[%s1153_s9 + $0x50] sm:$0xff]  ;;  %v505_v38 = vld [vmem:[%s1154_s5] ss:$0 sm:$0xff]  ;;  %v418_v44 = vld [vmem:[%s1153_s9 + $0x68] sm:$0xff] }
  0x16   :  { %763 = vmatpush3.bf16.msra.mxu1 %v762_v36  ;;  %v416_v36 = vld [vmem:[%s1153_s9 + $0x58] sm:$0xff]  ;;  %v417_v43 = vld [vmem:[%s1153_s9 + $0x60] sm:$0xff] }
  0x17   :  { %764 = vmatprep.subr.bf16.mxu1 %v824_v0  ;;  %v813_v37 = vpack.c.bf16 %v416_v36, %v415_v35  ;;  %v420_v49 = vld [vmem:[%s1153_s9 + $0x78] sm:$0xff] }
  0x18   :  { %742 = vmatpush3.bf16.msra.mxu0 %v741_v33  ;;  %v414_v33 = vld [vmem:[%s1153_s9 + $0x48] sm:$0xff] }
  0x19   :  { %743 = vmatprep.subr.bf16.mxu0 %v824_v0  ;;  %v810_v34 = vpack.c.bf16 %v414_v33, %v413_v32 }
  0x1a   :  { %766 = vmatpush3.bf16.msra.mxu1 %v765_v42 }
  0x1b   :  { %767 = vmatprep.subr.bf16.mxu1 %v824_v0 }
  0x1c   :  { %745 = vmatpush3.bf16.msra.mxu0 %v744_v39 }
  0x1d   :  { %746 = vmatprep.subr.bf16.mxu0 %v824_v0 }
  0x1e   :  { %769 = vmatpush3.bf16.msra.mxu1 %v768_v47 }
  0x1f   :  { %770 = vmatprep.subr.bf16.mxu1 %v824_v0 }
  0x20   :  { %748 = vmatpush3.bf16.msra.mxu0 %v747_v45  ;;  %v816_v45 = vpack.c.bf16 %v418_v44, %v417_v43 }
  0x21   :  { %650 = vmatprep.subr.mxu0 %v826_v4 }
  0x22   :  { %772 = vmatpush3.bf16.msra.mxu1 %v771_v51  ;;  %v16_v51 = vstv %s1155_s10 }
  0x23   :  { %613 = vmatmul.mubr.f32.vlgmr.msra.gmra.mrb[0].mxu0 %v41_v48  ;;  %773 = vmatprep.subr.bf16.mxu1 %v824_v0  ;;  %v419_v48 = vld [vmem:[%s1153_s9 + $0x70] sm:$0xff]  ;;  %17 = vst [vmem:[#allocation2] sm:$0x1] %v16_v51 }
  0x24   :  { %652 = vmatprep.mubr.msk.f32.mxu0 %vm825_vm0, %v826_v4  ;;  %651 = vmatpush3.msk.msra.mxu0 %vm252_vm1, %v247_v19  ;;  %v819_v50 = vpack.c.bf16 %v420_v49, %v419_v48 }
  0x25   :  { %797 = vmatprep.subr.bf16.mxu0 %v824_v0 }
  0x27   :  { %653 = vmatmul.mubr.msk.f32.vlgmr.msra.gmra.mrb[2].mxu0 %vm248_vm2, %v246_v20 }
  0x28   :  { %722 = vmatprep.mubr.msk.f32.mxu0 %vm825_vm0, %v826_v4  ;;  %799 = vmatpush3.bf16.msra.mxu0 %v798_v24 }
  0x29   :  { %800 = vmatprep.subr.bf16.mxu0 %v824_v0 }
  0x2c   :  { %802 = vmatpush3.bf16.msra.mxu0 %v801_v26 }
  0x2d   :  { %803 = vmatprep.subr.bf16.mxu0 %v824_v0 }
  0xf6   :  { %v131_v55 = vpop.f32.mrb[0].mxu0 }
  0xf7   :  { %v132_v56 = vadd.f32 %v504_v52, %v131_v55  ;;  %v614_v57 = vpop.f32.mrb[1].mxu0 }
  0xf8   :  { %v509_v57 = vld [vmem:[#allocation2] ss:$0 sm:$0xff] }
  0xf9   :  { %v135_v59 = vmax.f32 %v132_v56, 0.0 }
  0xfa   :  { %v322_v46 = vpop.f32.mrb[2].mxu0 }
  0xfb   :  { %648 = vmatmul.mubr.f32.vlgmr.msra.gmra.mrb[0].mxu1 %v135_v59  ;;  %v654_v47 = vpop.f32.mrb[3].mxu0 }
  0xfc   :  { %775 = vmatpush3.bf16.msra.mxu1 %v774_v58  ;;  %687 = vmatprep.mubr.msk.f32.mxu1 %vm825_vm0, %v826_v4  ;;  %v409_v4 = vld [vmem:[%s1153_s9 + $0x20] sm:$0xff] }
  0xfd   :  { %776 = vmatprep.subr.bf16.mxu1 %v824_v0  ;;  %v804_v28 = vpack.c.bf16 %v410_v27, %v409_v4 }
  0xff   :  { %805 = vmatpush3.bf16.msra.mxu0 %v804_v28 }
 0x100   :  { %778 = vmatpush3.bf16.msra.mxu1 %v777_v62  ;;  %806 = vmatprep.subr.bf16.mxu0 %v824_v0 }
 0x101   :  { %779 = vmatprep.subr.bf16.mxu1 %v824_v0 }
 0x103   :  { %808 = vmatpush3.bf16.msra.mxu0 %v807_v31 }
 0x104   :  { %781 = vmatpush3.bf16.msra.mxu1 %v780_v2  ;;  %809 = vmatprep.subr.bf16.mxu0 %v824_v0 }
 0x105   :  { %782 = vmatprep.subr.bf16.mxu1 %v824_v0 }
 0x107   :  { %811 = vmatpush3.bf16.msra.mxu0 %v810_v34 }
 0x108   :  { %784 = vmatpush3.bf16.msra.mxu1 %v783_v6  ;;  %812 = vmatprep.subr.bf16.mxu0 %v824_v0 }
 0x109   :  { %785 = vmatprep.subr.bf16.mxu1 %v824_v0 }
 0x10b   :  { %814 = vmatpush3.bf16.msra.mxu0 %v813_v37 }
 0x10c   :  { %787 = vmatpush3.bf16.msra.mxu1 %v786_v9  ;;  %815 = vmatprep.subr.bf16.mxu0 %v824_v0 }
 0x10d   :  { %788 = vmatprep.subr.bf16.mxu1 %v824_v0 }
 0x10f   :  { %817 = vmatpush3.bf16.msra.mxu0 %v816_v45 }
 0x110   :  { %790 = vmatpush3.bf16.msra.mxu1 %v789_v12  ;;  %818 = vmatprep.subr.bf16.mxu0 %v824_v0 }
 0x111   :  { %791 = vmatprep.subr.bf16.mxu1 %v824_v0 }
 0x113   :  { %820 = vmatpush3.bf16.msra.mxu0 %v819_v50 }
 0x114   :  { %793 = vmatpush3.bf16.msra.mxu1 %v792_v15 }
 0x115   :  { %794 = vmatprep.subr.bf16.mxu1 %v824_v0  ;;  %v508_v0 = vld [vmem:[%s1156_s8] ss:$0 sm:$0xff] }
 0x118   :  { %796 = vmatpush3.bf16.msra.mxu1 %v795_v18 }
 0x1ce   :  { %v225_v39 = vpop.f32.mrb[0].mxu1 }
 0x1cf   :  { %v226_v40 = vadd.f32 %v505_v38, %v225_v39  ;;  %v649_v41 = vpop.f32.mrb[1].mxu1 }
 0x1d1   :  { %v229_v42 = vmax.f32 %v226_v40, 0.0 }
 0x1d3   :  { %688 = vmatmul.mubr.f32.vlgmr.msra.gmra.mrb[2].mxu1 %v229_v42 }
 0x2a6   :  { %v392_v52 = vpop.f32.mrb[2].mxu1 }
 0x2a7   :  { %v393_v53 = vadd.f32 %v392_v52, %v322_v46  ;;  %v689_v54 = vpop.f32.mrb[3].mxu1 }
 0x2a9   :  { %v403_v55 = vadd.f32 %v508_v0, %v393_v53 }
 0x2ab   :  { %v404_v56 = vmax.f32 %v403_v55, 0.0 }
 0x2ad   :  { %723 = vmatmul.mubr.f32.vlgmr.msra.gmra.mrb[4].mxu0 %v404_v56 }
 0x380   :  { %v494_v58 = vpop.f32.mrb[4].mxu0 }
 0x381   :  { %v495_v59 = vadd.f32 %v509_v57, %v494_v58  ;;  %v724_v60 = vpop.f32.mrb[5].mxu0 }
 0x383   :  { %499 = vst.msk [vmem:[%s1157_s11] sm:$0x3] %vm498_vm3, %v495_v59 }

// kernel: roberta_class_forward.5
= control target key start
LH: loop header
LB: loop body
LE: loop exit
PB: predicated region body
PF: predicated region fallthrough
CT: control target
= control target key end

     0   :  { %v2273_v1 = vmov 0   ;;  %v2274_v2 = vmov 0.0   ;;  %vm2275_vm0 = vmmov 0   ;;  %v86_v27 = vlaneseq  ;;  %s2276_s18 = smov 96   ;;  %s2278_s19 = smov 32   ;;  %s2813_s2 = inlined_call_operand.vmem [shape: bf16[128,384], index: 2, kind: input, shape index: {}]   ;;  %s2814_s0 = inlined_call_operand.vmem [shape: bf16[2,8,128], index: 0, kind: input, shape index: {}]   ;;  %s2815_s3 = inlined_call_operand.vmem [shape: f32[1,384], index: 3, kind: input, shape index: {}]   ;;  %s2816_s1 = inlined_call_operand.vmem [shape: f32[2,1,8], index: 1, kind: input, shape index: {}]   ;;  %s2817_s4 = inlined_call_operand.vmem [shape: bf16[128,128], index: 4, kind: input, shape index: {}]   ;;  %s2818_s5 = inlined_call_operand.vmem [shape: f32[1,128], index: 5, kind: input, shape index: {}]   ;;  %s2819_s8 = inlined_call_operand.vmem [shape: bf16[128,256], index: 8, kind: input, shape index: {}]   ;;  %s2820_s6 = inlined_call_operand.vmem [shape: f32[1,128], index: 6, kind: input, shape index: {}]   ;;  %s2821_s7 = inlined_call_operand.vmem [shape: f32[1,128], index: 7, kind: input, shape index: {}]   ;;  %s2822_s10 = inlined_call_operand.vmem [shape: bf16[256,128], index: 10, kind: input, shape index: {}]   ;;  %s2823_s9 = inlined_call_operand.vmem [shape: f32[1,256], index: 9, kind: input, shape index: {}]   ;;  %s2824_s11 = inlined_call_operand.vmem [shape: f32[1,128], index: 11, kind: input, shape index: {}]   ;;  %s2825_s12 = inlined_call_operand.vmem [shape: f32[1,128], index: 12, kind: input, shape index: {}]   ;;  %s2826_s13 = inlined_call_operand.vmem [shape: f32[1,128], index: 13, kind: input, shape index: {}]   ;;  %s2827_s14 = inlined_call_operand.vmem [shape: bf16[2,8,128], index: 14, kind: output, shape index: {}]  }
   0x1   :  { %v2143_v0 = vld [vmem:[%s2813_s2 + $0x4] ss:$12 sps:$4 sm:$0xff]   ;;  %267 = vmatprep.mubr.bf16.mxu0 %v2273_v1  ;;  %1986 = vmatprep.subr.bf16.mxu1 %v2274_v2  ;;  %v2145_v3 = vld [vmem:[%s2813_s2] ss:$12 sps:$4 sm:$0xff]   ;;  %v2146_v4 = vld [vmem:[%s2813_s2 + $0x1c] ss:$12 sps:$4 sm:$0xff]  }
   0x2   :  { %235 = vmatprep.subr.bf16.mxu0 %v2143_v0  ;;  %v2148_v5 = vld [vmem:[%s2813_s2 + $0x18] ss:$12 sps:$4 sm:$0xff]   ;;  %v2149_v6 = vld [vmem:[%s2813_s2 + $0x34] ss:$12 sps:$4 sm:$0xff]   ;;  %v2151_v7 = vld [vmem:[%s2813_s2 + $0x30] ss:$12 sps:$4 sm:$0xff]   ;;  %2002 = vmatprep.mubr.msk.bf16.mxu1 %vm2275_vm0, %v2274_v2 }
   0x3   :  { %236 = vmatpush1.bf16.msra.mxu0 %v2145_v3  ;;  %v2152_v8 = vld [vmem:[%s2813_s2 + $0x4c] ss:$12 sps:$4 sm:$0xff]   ;;  %v2154_v9 = vld [vmem:[%s2813_s2 + $0x48] ss:$12 sps:$4 sm:$0xff]   ;;  %v2155_v11 = vld [vmem:[%s2813_s2 + $0x64] ss:$12 sps:$4 sm:$0xff]  }
   0x4   :  { %237 = vmatprep.subr.bf16.mxu0 %v2146_v4  ;;  %v2168_v10 = vld [vmem:[%s2813_s2 + $0x8] ss:$12 sps:$4 sm:$0xff]   ;;  %v2169_v12 = vld [vmem:[%s2813_s2 + $0x20] ss:$12 sps:$4 sm:$0xff]   ;;  %v2170_v15 = vld [vmem:[%s2813_s2 + $0x38] ss:$12 sps:$4 sm:$0xff]  }
   0x5   :  { %1987 = vmatpush3.bf16.msra.mxu1 %v2168_v10  ;;  %v2157_v13 = vld [vmem:[%s2813_s2 + $0x60] ss:$12 sps:$4 sm:$0xff]   ;;  %v2158_v14 = vld [vmem:[%s2813_s2 + $0x7c] ss:$12 sps:$4 sm:$0xff]   ;;  %v2160_v16 = vld [vmem:[%s2813_s2 + $0x78] ss:$12 sps:$4 sm:$0xff]  }
   0x6   :  { %1988 = vmatprep.subr.bf16.mxu1 %v2274_v2  ;;  %v2161_v17 = vld [vmem:[%s2813_s2 + $0x94] ss:$12 sps:$4 sm:$0xff]   ;;  %v2171_v18 = vld [vmem:[%s2813_s2 + $0x50] ss:$12 sps:$4 sm:$0xff]   ;;  %v2164_v20 = vld [vmem:[%s2813_s2 + $0xac] ss:$12 sps:$4 sm:$0xff]  }
   0x7   :  { %238 = vmatpush1.bf16.msra.mxu0 %v2148_v5  ;;  %v2163_v19 = vld [vmem:[%s2813_s2 + $0x90] ss:$12 sps:$4 sm:$0xff]   ;;  %v2172_v21 = vld [vmem:[%s2813_s2 + $0x68] ss:$12 sps:$4 sm:$0xff]   ;;  %v2426_v23 = vld [vmem:[%s2814_s0] sm:$0xff]   ;;  %v2450_v28 = vshrl.u32 %v86_v27, 7 }
   0x8   :  { %239 = vmatprep.subr.bf16.mxu0 %v2149_v6  ;;  %v2166_v22 = vld [vmem:[%s2813_s2 + $0xa8] ss:$12 sps:$4 sm:$0xff]   ;;  %v2173_v24 = vld [vmem:[%s2813_s2 + $0x80] ss:$12 sps:$4 sm:$0xff]   ;;  %v2174_v25 = vld [vmem:[%s2813_s2 + $0x98] ss:$12 sps:$4 sm:$0xff]  }
   0x9   :  { %1989 = vmatpush3.bf16.msra.mxu1 %v2169_v12  ;;  %v2175_v26 = vld [vmem:[%s2813_s2 + $0xb0] ss:$12 sps:$4 sm:$0xff]   ;;  %v92_v29 = vsub.s32 1, %v2450_v28  ;;  %v84_v30 = vld [vmem:[%s2815_s3] sm:$0x7]  ;;  %v88_v32 = vsub.s32 0, %v2450_v28 }
   0xa   :  { %1990 = vmatprep.subr.bf16.mxu1 %v2274_v2  ;;  %vm339_vm1 = vcmask 261120   ;;  %v96_v48 = vsub.s32 2, %v2450_v28  ;;  %vm460_vm2 = vcmask 1043456   ;;  %v2492_v58 = vld [vmem:[%s2816_s1] ss:$0 sm:$0xff]  ;;  %vm432_vm3 = vcmask 64512  }
   0xb   :  { %240 = vmatpush1.bf16.msra.mxu0 %v2151_v7  ;;  %v93_v31 = vrot.slane %v84_v30, %v92_v29  ;;  %v89_v38 = vrot.slane %v84_v30, %v88_v32  ;;  %v2499_v3 = vld [vmem:[%s2816_s1 + $0x1] ss:$0 sm:$0xff]  ;;  %s2277_s1 = smov 64   ;;  %vm1242_vm4 = vcmask 523264   ;;  %vm1245_vm5 = vcmask 785408  }
   0xc   :  { %241 = vmatprep.subr.bf16.mxu0 %v2152_v8  ;;  %v97_v49 = vrot.slane %v84_v30, %v96_v48 }
   0xd   :  { %1991 = vmatpush3.bf16.msra.mxu1 %v2170_v15 }
   0xe   :  { %1992 = vmatprep.subr.bf16.mxu1 %v2274_v2 }
   0xf   :  { %242 = vmatpush1.bf16.msra.mxu0 %v2154_v9 }
  0x10   :  { %243 = vmatprep.subr.bf16.mxu0 %v2155_v11 }
  0x11   :  { %1993 = vmatpush3.bf16.msra.mxu1 %v2171_v18 }
  0x12   :  { %1994 = vmatprep.subr.bf16.mxu1 %v2274_v2 }
  0x13   :  { %244 = vmatpush1.bf16.msra.mxu0 %v2157_v13 }
  0x14   :  { %245 = vmatprep.subr.bf16.mxu0 %v2158_v14 }
  0x15   :  { %1995 = vmatpush3.bf16.msra.mxu1 %v2172_v21 }
  0x16   :  { %1996 = vmatprep.subr.bf16.mxu1 %v2274_v2 }
  0x17   :  { %246 = vmatpush1.bf16.msra.mxu0 %v2160_v16 }
  0x18   :  { %247 = vmatprep.subr.bf16.mxu0 %v2161_v17 }
  0x19   :  { %1997 = vmatpush3.bf16.msra.mxu1 %v2173_v24 }
  0x1a   :  { %1998 = vmatprep.subr.bf16.mxu1 %v2274_v2 }
  0x1b   :  { %248 = vmatpush1.bf16.msra.mxu0 %v2163_v19 }
  0x1c   :  { %249 = vmatprep.subr.bf16.mxu0 %v2164_v20 }
  0x1d   :  { %1999 = vmatpush3.bf16.msra.mxu1 %v2174_v25 }
  0x1e   :  { %2000 = vmatprep.subr.bf16.mxu1 %v2274_v2 }
  0x1f   :  { %250 = vmatpush1.bf16.msra.mxu0 %v2166_v22 }
  0x20   :  { %2030 = vmatprep.subr.bf16.mxu0 %v2274_v2 }
  0x21   :  { %2001 = vmatpush3.bf16.msra.mxu1 %v2175_v26 }
  0x22   :  { %268 = vmatmul.mubr.bf16.vlgmr.msra.gmra.mrb[0].mxu0 %v2426_v23  ;;  %2006 = vmatprep.subr.bf16.mxu1 %v2274_v2 }
  0x23   :  { %2032 = vmatprep.mubr.msk.bf16.mxu0 %vm2275_vm0, %v2274_v2 }
  0x24   :  { %2003 = vmatmul.mubr.bf16.vlgmr.msra.gmra.mrb[0].mxu1 %v2426_v23 }
  0x25   :  { %2008 = vmatprep.mubr.msk.bf16.mxu1 %vm2275_vm0, %v2274_v2 }
  0xf5   :  { %v269_v33 = vpop.f32.mrb[0].mxu0 }
  0xf6   :  { %v271_v34 = vpop.f32.mrb[1].mxu0  ;;  %v270_v42 = vadd.f32 %v269_v33, %v89_v38 }
  0xf7   :  { %v272_v35 = vadd.f32 %v271_v34, %v93_v31  ;;  %v273_v36 = vpop.f32.mrb[2].mxu0  ;;  %v312_v50 = vpop.f32.mrb[0].mxu1 }
  0xf8   :  { %v275_v37 = vpop.f32.mrb[3].mxu0  ;;  %v2468_v44 = vpack.c.bf16 %v270_v42, %v270_v42  ;;  %v274_v46 = vadd.f32 %v273_v36, %v89_v38  ;;  %v313_v51 = vadd.f32 %v312_v50, %v97_v49  ;;  %v2004_v52 = vpop.f32.mrb[1].mxu1 }
  0xf9   :  { %v2461_v39 = vpack.c.bf16 %v272_v35, %v272_v35  ;;  %v276_v40 = vadd.f32 %v275_v37, %v93_v31  ;;  %v315_v53 = vpop.f32.mrb[2].mxu1 }
  0xfa   :  { %v2477_v47 = vpack.c.bf16 %v274_v46, %v274_v46  ;;  %v2484_v54 = vpack.c.bf16 %v313_v51, %v313_v51  ;;  %v316_v55 = vadd.f32 %v315_v53, %v97_v49  ;;  %v2005_v56 = vpop.f32.mrb[3].mxu1 }
  0xfb   :  { %v344_v41 = vsel %vm339_vm1, %v2461_v39, 0  ;;  %v2466_v43 = vpack.c.bf16 %v276_v40, %v276_v40 }
  0xfc   :  { %2007 = vmatpush3.bf16.xpose.msra.mxu1 %v344_v41  ;;  %v462_v57 = vsel %vm460_vm2, %v2484_v54, 0  ;;  %v2515_v25 = vpack.c.bf16 %v316_v55, %v316_v55 }
  0xfd   :  { %2012 = vmatprep.subr.bf16.mxu1 %v2274_v2  ;;  %v390_v45 = vsel %vm339_vm1, %v2466_v43, 0 }
  0xfe   :  { %v508_v30 = vsel %vm460_vm2, %v2515_v25, 0 }
 0x103   :  { %2009 = vmatmul.mubr.msk.bf16.vlgmr.msra.gmra.mrb[4].mxu1 %vm339_vm1, %v2468_v44 }
 0x104   :  { %2013 = vmatpush3.bf16.xpose.msra.mxu1 %v390_v45  ;;  %2014 = vmatprep.mubr.msk.bf16.mxu1 %vm2275_vm0, %v2274_v2 }
 0x105   :  { %2018 = vmatprep.subr.bf16.mxu1 %v2274_v2 }
 0x10b   :  { %2015 = vmatmul.mubr.msk.bf16.vlgmr.msra.gmra.mrb[8].mxu1 %vm339_vm1, %v2477_v47 }
 0x10c   :  { %2020 = vmatprep.mubr.msk.bf16.mxu1 %vm2275_vm0, %v2274_v2  ;;  %2019 = vmatpush3.bf16.msra.mxu1 %v462_v57 }
 0x10d   :  { %2024 = vmatprep.subr.bf16.mxu1 %v2274_v2 }
 0x1d6   :  { %v380_v59 = vpop.f32.mrb[4].mxu1 }
 0x1d7   :  { %v381_v60 = vadd.f32 %v2492_v58, %v380_v59  ;;  %v2010_v61 = vpop.f32.mrb[5].mxu1 }
 0x1d8   :  { %v383_v62 = vpop.f32.mrb[6].mxu1 }
 0x1d9   :  { %v2011_v63 = vpop.f32.mrb[7].mxu1  ;;  %v433_v0 = vsel %vm432_vm3, %v381_v60, -inf }
 0x1da   :  { %434 = vmax.xlane.f32.xlu0 %v433_v0 }
 0x1de   :  { %v426_v4 = vpop.f32.mrb[8].mxu1 }
 0x1df   :  { %v427_v5 = vadd.f32 %v2499_v3, %v426_v4  ;;  %v2016_v6 = vpop.f32.mrb[9].mxu1 }
 0x1e0   :  { %v429_v7 = vpop.f32.mrb[10].mxu1 }
 0x1e1   :  { %v2017_v8 = vpop.f32.mrb[11].mxu1  ;;  %v436_v9 = vsel %vm432_vm3, %v427_v5, -inf }
 0x1e2   :  { %437 = vmax.xlane.f32.xlu0 %v436_v9 }
 0x1f8   :  { %554 = vrot.lane.b32.xlu0 %v2461_v39, %s2276_s18 }
 0x267   :  { %v435_v10 = vpop.xlane.xlu0 %434 }
 0x268   :  { %v439_v11 = vsub.f32 %v381_v60, %v435_v10 }
 0x26a   :  { %v441_v12 = vmul.f32 1.442695, %v439_v11 }
 0x26c   :  { %2225 = vpow2.f32 %v441_v12 }
 0x26f   :  { %v438_v13 = vpop.xlane.xlu0 %437 }
 0x270   :  { %v440_v18 = vsub.f32 %v427_v5, %v438_v13 }
 0x272   :  { %v443_v19 = vmul.f32 1.442695, %v440_v18 }
 0x273   :  { %v555_v14 = vpop.permute.xlu0 %554 }
 0x274   :  { %v560_v15 = vsel %vm339_vm1, %v555_v14, 0  ;;  %2227 = vpow2.f32 %v443_v19 }
 0x275   :  { %2031 = vmatpush3.bf16.xpose.msra.mxu0 %v560_v15 }
 0x276   :  { %v2226_v16 = vpop.eup %2225  ;;  %2042 = vmatprep.subr.bf16.mxu0 %v2274_v2 }
 0x277   :  { %v445_v17 = vsel %vm432_vm3, %v2226_v16, 0.0 }
 0x278   :  { %446 = vadd.xlane.f32.xlu1 %v445_v17 }
 0x27e   :  { %v2228_v20 = vpop.eup %2227 }
 0x27f   :  { %v448_v21 = vsel %vm432_vm3, %v2228_v20, 0.0 }
 0x289   :  { %606 = vrot.lane.b32.xlu1 %v2466_v43, %s2276_s18 }
 0x2ad   :  { %449 = vadd.xlane.f32.xlu1 %v448_v21 }
 0x2be   :  { %551 = vrot.lane.b32.xlu1 %v2468_v44, %s2276_s18 }
 0x2c2   :  { %603 = vrot.lane.b32.xlu1 %v2477_v47, %s2276_s18 }
 0x305   :  { %v447_v22 = vpop.xlane.xlu1 %446 }
 0x306   :  { %2229 = vrcp.f32 %v447_v22 }
 0x309   :  { %v607_v31 = vpop.permute.xlu1 %606 }
 0x30a   :  { %v612_v38 = vsel %vm339_vm1, %v607_v31, 0 }
 0x310   :  { %v2230_v24 = vpop.eup %2229 }
 0x311   :  { %v453_v26 = vmul.f32 %v2230_v24, %v2226_v16 }
 0x313   :  { %v455_v27 = vpack.c.bf16 %v453_v26, %v453_v26 }
 0x315   :  { %2021 = vmatmul.mubr.msk.bf16.vlgmr.msra.gmra.mrb[12].mxu1 %vm432_vm3, %v455_v27 }
 0x316   :  { %2025 = vmatpush3.bf16.msra.mxu1 %v508_v30  ;;  %2026 = vmatprep.mubr.msk.bf16.mxu1 %vm2275_vm0, %v2274_v2 }
 0x317   :  { %2036 = vmatprep.subr.bf16.mxu1 %v2274_v2 }
 0x33a   :  { %v450_v33 = vpop.xlane.xlu1 %449 }
 0x33b   :  { %2231 = vrcp.f32 %v450_v33 }
 0x33e   :  { %v552_v34 = vpop.permute.xlu1 %551 }
 0x33f   :  { %2033 = vmatmul.mubr.msk.bf16.vlgmr.msra.gmra.mrb[4].mxu0 %vm339_vm1, %v552_v34 }
 0x340   :  { %2044 = vmatprep.mubr.msk.bf16.mxu0 %vm2275_vm0, %v2274_v2 }
 0x342   :  { %v604_v40 = vpop.permute.xlu1 %603 }
 0x345   :  { %v2232_v35 = vpop.eup %2231 }
 0x346   :  { %v454_v36 = vmul.f32 %v2232_v35, %v2228_v20 }
 0x348   :  { %v456_v37 = vpack.c.bf16 %v454_v36, %v454_v36 }
 0x34a   :  { %2027 = vmatmul.mubr.msk.bf16.vlgmr.msra.gmra.mrb[16].mxu1 %vm432_vm3, %v456_v37 }
 0x34b   :  { %2037 = vmatpush3.bf16.xpose.msra.mxu1 %v612_v38  ;;  %2038 = vmatprep.mubr.msk.bf16.mxu1 %vm2275_vm0, %v2274_v2 }
 0x34c   :  { %2048 = vmatprep.subr.bf16.mxu1 %v2274_v2 }
 0x352   :  { %2039 = vmatmul.mubr.msk.bf16.vlgmr.msra.gmra.mrb[20].mxu1 %vm339_vm1, %v604_v40 }
 0x353   :  { %2050 = vmatprep.mubr.msk.bf16.mxu1 %vm2275_vm0, %v2274_v2 }
 0x3e8   :  { %v2534_v41 = vpop.f32.mrb[12].mxu1 }
 0x3e9   :  { %v2022_v42 = vpop.f32.mrb[13].mxu1 }
 0x3ea   :  { %v501_v45 = vpop.f32.mrb[14].mxu1 }
 0x3eb   :  { %v2023_v46 = vpop.f32.mrb[15].mxu1 }
 0x412   :  { %v596_v48 = vpop.f32.mrb[4].mxu0 }
 0x413   :  { %v597_v49 = vadd.f32 %v2492_v58, %v596_v48  ;;  %v2034_v50 = vpop.f32.mrb[5].mxu0 }
 0x414   :  { %v599_v51 = vpop.f32.mrb[6].mxu0 }
 0x415   :  { %v2035_v52 = vpop.f32.mrb[7].mxu0  ;;  %v654_v53 = vsel %vm432_vm3, %v597_v49, -inf }
 0x416   :  { %655 = vmax.xlane.f32.xlu0 %v654_v53 }
 0x41d   :  { %v2538_v55 = vpop.f32.mrb[16].mxu1 }
 0x41e   :  { %v2028_v56 = vpop.f32.mrb[17].mxu1 }
 0x41f   :  { %v547_v57 = vpop.f32.mrb[18].mxu1 }
 0x420   :  { %v2029_v59 = vpop.f32.mrb[19].mxu1 }
 0x425   :  { %v648_v60 = vpop.f32.mrb[20].mxu1 }
 0x426   :  { %v649_v61 = vadd.f32 %v2499_v3, %v648_v60  ;;  %v2040_v62 = vpop.f32.mrb[21].mxu1 }
 0x427   :  { %v651_v63 = vpop.f32.mrb[22].mxu1 }
 0x428   :  { %v2041_v0 = vpop.f32.mrb[23].mxu1  ;;  %v657_v4 = vsel %vm432_vm3, %v649_v61, -inf }
 0x429   :  { %658 = vmax.xlane.f32.xlu1 %v657_v4 }
 0x43a   :  { %728 = vrot.lane.b32.xlu1 %v2515_v25, %s2276_s18 }
 0x43e   :  { %778 = vrot.lane.b32.xlu1 %v2461_v39, %s2277_s1 }
 0x442   :  { %828 = vrot.lane.b32.xlu1 %v2466_v43, %s2277_s1 }
 0x446   :  { %826 = vrot.lane.b32.xlu1 %v2477_v47, %s2277_s1 }
 0x4a3   :  { %v656_v5 = vpop.xlane.xlu0 %655 }
 0x4a4   :  { %v660_v6 = vsub.f32 %v597_v49, %v656_v5 }
 0x4a6   :  { %v662_v7 = vmul.f32 1.442695, %v660_v6 }
 0x4a8   :  { %2233 = vpow2.f32 %v662_v7 }
 0x4b2   :  { %v2234_v8 = vpop.eup %2233 }
 0x4b3   :  { %v666_v9 = vsel %vm432_vm3, %v2234_v8, 0.0 }
 0x4b4   :  { %667 = vadd.xlane.f32.xlu0 %v666_v9 }
 0x4b6   :  { %v659_v10 = vpop.xlane.xlu1 %658 }
 0x4b7   :  { %v661_v11 = vsub.f32 %v649_v61, %v659_v10 }
 0x4b9   :  { %v664_v12 = vmul.f32 1.442695, %v661_v11 }
 0x4ba   :  { %v729_v13 = vpop.permute.xlu1 %728 }
 0x4bb   :  { %2235 = vpow2.f32 %v664_v12  ;;  %v734_v14 = vsel %vm460_vm2, %v729_v13, 0 }
 0x4bc   :  { %2049 = vmatpush3.bf16.msra.mxu1 %v734_v14 }
 0x4bd   :  { %2060 = vmatprep.subr.bf16.mxu1 %v2274_v2 }
 0x4be   :  { %v779_v24 = vpop.permute.xlu1 %778 }
 0x4bf   :  { %v784_v33 = vsel %vm339_vm1, %v779_v24, 0 }
 0x4c2   :  { %v829_v31 = vpop.permute.xlu1 %828 }
 0x4c3   :  { %v834_v35 = vsel %vm339_vm1, %v829_v31, 0 }
 0x4c5   :  { %v2236_v15 = vpop.eup %2235 }
 0x4c6   :  { %v669_v16 = vsel %vm432_vm3, %v2236_v15, 0.0  ;;  %v827_v37 = vpop.permute.xlu1 %826 }
 0x4c7   :  { %670 = vadd.xlane.f32.xlu0 %v669_v16 }
 0x4dd   :  { %679 = vrot.lane.b32.xlu0 %v2484_v54, %s2276_s18 }
 0x4e1   :  { %776 = vrot.lane.b32.xlu0 %v2468_v44, %s2277_s1 }
 0x541   :  { %v668_v17 = vpop.xlane.xlu0 %667 }
 0x542   :  { %2237 = vrcp.f32 %v668_v17 }
 0x54c   :  { %v2238_v18 = vpop.eup %2237 }
 0x54d   :  { %v674_v20 = vmul.f32 %v2238_v18, %v2234_v8 }
 0x54f   :  { %v676_v26 = vpack.c.bf16 %v674_v20, %v674_v20 }
 0x554   :  { %v671_v19 = vpop.xlane.xlu0 %670 }
 0x555   :  { %2239 = vrcp.f32 %v671_v19 }
 0x558   :  { %v680_v21 = vpop.permute.xlu0 %679 }
 0x559   :  { %v685_v22 = vsel %vm460_vm2, %v680_v21, 0 }
 0x55a   :  { %2043 = vmatpush3.bf16.msra.mxu0 %v685_v22 }
 0x55b   :  { %2054 = vmatprep.subr.bf16.mxu0 %v2274_v2 }
 0x55c   :  { %v777_v36 = vpop.permute.xlu0 %776 }
 0x55d   :  { %2045 = vmatmul.mubr.msk.bf16.vlgmr.msra.gmra.mrb[8].mxu0 %vm432_vm3, %v676_v26 }
 0x55e   :  { %2056 = vmatprep.mubr.msk.bf16.mxu0 %vm2275_vm0, %v2274_v2 }
 0x55f   :  { %v2240_v27 = vpop.eup %2239 }
 0x560   :  { %v675_v30 = vmul.f32 %v2240_v27, %v2236_v15 }
 0x562   :  { %v677_v34 = vpack.c.bf16 %v675_v30, %v675_v30 }
 0x563   :  { %2055 = vmatpush3.bf16.xpose.msra.mxu0 %v784_v33 }
 0x564   :  { %2051 = vmatmul.mubr.msk.bf16.vlgmr.msra.gmra.mrb[24].mxu1 %vm432_vm3, %v677_v34  ;;  %2066 = vmatprep.subr.bf16.mxu0 %v2274_v2 }
 0x565   :  { %2061 = vmatpush3.bf16.xpose.msra.mxu1 %v834_v35  ;;  %2062 = vmatprep.mubr.msk.bf16.mxu1 %vm2275_vm0, %v2274_v2 }
 0x566   :  { %2072 = vmatprep.subr.bf16.mxu1 %v2274_v2 }
 0x56a   :  { %2057 = vmatmul.mubr.msk.bf16.vlgmr.msra.gmra.mrb[12].mxu0 %vm339_vm1, %v777_v36 }
 0x56b   :  { %2068 = vmatprep.mubr.msk.bf16.mxu0 %vm2275_vm0, %v2274_v2 }
 0x56c   :  { %2063 = vmatmul.mubr.msk.bf16.vlgmr.msra.gmra.mrb[28].mxu1 %vm339_vm1, %v827_v37 }
 0x56d   :  { %2074 = vmatprep.mubr.msk.bf16.mxu1 %vm2275_vm0, %v2274_v2 }
 0x630   :  { %v2576_v38 = vpop.f32.mrb[8].mxu0 }
 0x631   :  { %v2046_v40 = vpop.f32.mrb[9].mxu0 }
 0x632   :  { %v724_v42 = vpop.f32.mrb[10].mxu0 }
 0x633   :  { %v2047_v45 = vpop.f32.mrb[11].mxu0 }
 0x637   :  { %v2578_v46 = vpop.f32.mrb[24].mxu1 }
 0x638   :  { %v2128_v48 = vpack.i.bf16 %v2578_v46, %v2576_v38  ;;  %v2052_v49 = vpop.f32.mrb[25].mxu1 }
 0x639   :  { %v773_v50 = vpop.f32.mrb[26].mxu1 }
 0x63a   :  { %v2053_v51 = vpop.f32.mrb[27].mxu1 }
 0x63d   :  { %v820_v52 = vpop.f32.mrb[12].mxu0 }
 0x63e   :  { %v821_v53 = vadd.f32 %v2492_v58, %v820_v52  ;;  %v2058_v56 = vpop.f32.mrb[13].mxu0 }
 0x63f   :  { %v823_v57 = vpop.f32.mrb[14].mxu0  ;;  %v870_v59 = vpop.f32.mrb[28].mxu1 }
 0x640   :  { %v871_v60 = vadd.f32 %v2499_v3, %v870_v59  ;;  %v2059_v61 = vpop.f32.mrb[15].mxu0  ;;  %v2064_v62 = vpop.f32.mrb[29].mxu1  ;;  %v876_v63 = vsel %vm432_vm3, %v821_v53, -inf }
 0x641   :  { %877 = vmax.xlane.f32.xlu0 %v876_v63  ;;  %v873_v0 = vpop.f32.mrb[30].mxu1 }
 0x642   :  { %v2065_v4 = vpop.f32.mrb[31].mxu1  ;;  %v879_v5 = vsel %vm432_vm3, %v871_v60, -inf }
 0x643   :  { %880 = vmax.xlane.f32.xlu1 %v879_v5 }
 0x654   :  { %948 = vrot.lane.b32.xlu1 %v2515_v25, %s2277_s1 }
 0x658   :  { %998 = vrot.lane.b32.xlu1 %v2461_v39, %s2278_s19 }
 0x65c   :  { %1048 = vrot.lane.b32.xlu1 %v2466_v43, %s2278_s19 }
 0x660   :  { %1046 = vrot.lane.b32.xlu1 %v2477_v47, %s2278_s19 }
 0x6ce   :  { %v878_v6 = vpop.xlane.xlu0 %877 }
 0x6cf   :  { %v882_v7 = vsub.f32 %v821_v53, %v878_v6 }
 0x6d0   :  { %v881_v8 = vpop.xlane.xlu1 %880 }
 0x6d1   :  { %v884_v9 = vmul.f32 1.442695, %v882_v7  ;;  %v883_v10 = vsub.f32 %v871_v60, %v881_v8 }
 0x6d3   :  { %2241 = vpow2.f32 %v884_v9  ;;  %v886_v11 = vmul.f32 1.442695, %v883_v10 }
 0x6d4   :  { %v949_v12 = vpop.permute.xlu1 %948 }
 0x6d5   :  { %2243 = vpow2.f32 %v886_v11  ;;  %v954_v13 = vsel %vm460_vm2, %v949_v12, 0 }
 0x6d6   :  { %2073 = vmatpush3.bf16.msra.mxu1 %v954_v13 }
 0x6d7   :  { %2084 = vmatprep.subr.bf16.mxu1 %v2274_v2 }
 0x6d8   :  { %v999_v20 = vpop.permute.xlu1 %998 }
 0x6dc   :  { %v1049_v27 = vpop.permute.xlu1 %1048 }
 0x6dd   :  { %v2242_v39 = vpop.eup %2241  ;;  %v1054_v31 = vsel %vm339_vm1, %v1049_v27, 0 }
 0x6de   :  { %v888_v43 = vsel %vm432_vm3, %v2242_v39, 0.0 }
 0x6df   :  { %v2244_v14 = vpop.eup %2243  ;;  %889 = vadd.xlane.f32.xlu0 %v888_v43 }
 0x6e0   :  { %v891_v47 = vsel %vm432_vm3, %v2244_v14, 0.0  ;;  %v1047_v34 = vpop.permute.xlu1 %1046 }
 0x6e3   :  { %892 = vadd.xlane.f32.xlu0 %v891_v47 }
 0x6f9   :  { %900 = vrot.lane.b32.xlu0 %v2484_v54, %s2277_s1 }
 0x6fd   :  { %996 = vrot.lane.b32.xlu0 %v2468_v44, %s2278_s19  ;;  %v1004_v44 = vsel %vm339_vm1, %v999_v20, 0  ;;  %v2178_v20 = vld [vmem:[%s2817_s4 + $0x10] sm:$0xff]  }
 0x76c   :  { %v890_v15 = vpop.xlane.xlu0 %889 }
 0x76d   :  { %2245 = vrcp.f32 %v890_v15 }
 0x770   :  { %v893_v16 = vpop.xlane.xlu0 %892 }
 0x771   :  { %2247 = vrcp.f32 %v893_v16 }
 0x774   :  { %v901_v17 = vpop.permute.xlu0 %900 }
 0x775   :  { %v906_v18 = vsel %vm460_vm2, %v901_v17, 0 }
 0x776   :  { %2067 = vmatpush3.bf16.msra.mxu0 %v906_v18  ;;  %v2176_v18 = vld [vmem:[%s2817_s4] sm:$0xff]  }
 0x777   :  { %v2246_v19 = vpop.eup %2245  ;;  %2078 = vmatprep.subr.bf16.mxu0 %v2274_v2 }
 0x778   :  { %v896_v21 = vmul.f32 %v2246_v19, %v2242_v39  ;;  %v997_v33 = vpop.permute.xlu0 %996  ;;  %v2177_v19 = vld [vmem:[%s2817_s4 + $0x8] sm:$0xff]  }
 0x77a   :  { %v898_v22 = vpack.c.bf16 %v896_v21, %v896_v21  ;;  %v2180_v21 = vld [vmem:[%s2817_s4 + $0x20] sm:$0xff]  }
 0x77b   :  { %v2248_v24 = vpop.eup %2247 }
 0x77c   :  { %v897_v26 = vmul.f32 %v2248_v24, %v2244_v14  ;;  %2069 = vmatmul.mubr.msk.bf16.vlgmr.msra.gmra.mrb[16].mxu0 %vm432_vm3, %v898_v22  ;;  %v2181_v22 = vld [vmem:[%s2817_s4 + $0x28] sm:$0xff]   ;;  %v2182_v24 = vld [vmem:[%s2817_s4 + $0x30] sm:$0xff]  }
 0x77d   :  { %2080 = vmatprep.mubr.msk.bf16.mxu0 %vm2275_vm0, %v2274_v2 }
 0x77e   :  { %v899_v30 = vpack.c.bf16 %v897_v26, %v897_v26  ;;  %v2183_v26 = vld [vmem:[%s2817_s4 + $0x38] sm:$0xff]  }
 0x77f   :  { %2079 = vmatpush3.bf16.xpose.msra.mxu0 %v1004_v44 }
 0x780   :  { %2075 = vmatmul.mubr.msk.bf16.vlgmr.msra.gmra.mrb[32].mxu1 %vm432_vm3, %v899_v30  ;;  %2090 = vmatprep.subr.bf16.mxu0 %v2274_v2 }
 0x781   :  { %2085 = vmatpush3.bf16.xpose.msra.mxu1 %v1054_v31  ;;  %2086 = vmatprep.mubr.msk.bf16.mxu1 %vm2275_vm0, %v2274_v2 }
 0x782   :  { %2096 = vmatprep.subr.bf16.mxu1 %v2274_v2 }
 0x786   :  { %2081 = vmatmul.mubr.msk.bf16.vlgmr.msra.gmra.mrb[20].mxu0 %vm339_vm1, %v997_v33 }
 0x787   :  { %2092 = vmatprep.mubr.msk.bf16.mxu0 %vm2275_vm0, %v2274_v2 }
 0x788   :  { %2087 = vmatmul.mubr.msk.bf16.vlgmr.msra.gmra.mrb[36].mxu1 %vm339_vm1, %v1047_v34 }
 0x789   :  { %2098 = vmatprep.mubr.msk.bf16.mxu1 %vm2275_vm0, %v2274_v2 }
 0x84f   :  { %v942_v35 = vpop.f32.mrb[16].mxu0 }
 0x850   :  { %v2070_v36 = vpop.f32.mrb[17].mxu0 }
 0x851   :  { %v945_v37 = vpop.f32.mrb[18].mxu0 }
 0x852   :  { %v2071_v40 = vpop.f32.mrb[19].mxu0 }
 0x853   :  { %v990_v42 = vpop.f32.mrb[32].mxu1 }
 0x854   :  { %v2133_v45 = vpack.i.bf16 %v990_v42, %v942_v35  ;;  %v2076_v49 = vpop.f32.mrb[33].mxu1 }
 0x855   :  { %v993_v50 = vpop.f32.mrb[34].mxu1 }
 0x856   :  { %v2077_v51 = vpop.f32.mrb[35].mxu1 }
 0x859   :  { %v1040_v52 = vpop.f32.mrb[20].mxu0 }
 0x85a   :  { %v1041_v53 = vadd.f32 %v2492_v58, %v1040_v52  ;;  %v2082_v56 = vpop.f32.mrb[21].mxu0 }
 0x85b   :  { %v1043_v57 = vpop.f32.mrb[22].mxu0  ;;  %v1090_v59 = vpop.f32.mrb[36].mxu1 }
 0x85c   :  { %v1091_v60 = vadd.f32 %v2499_v3, %v1090_v59  ;;  %v2083_v61 = vpop.f32.mrb[23].mxu0  ;;  %v2088_v62 = vpop.f32.mrb[37].mxu1  ;;  %v1096_v63 = vsel %vm432_vm3, %v1041_v53, -inf }
 0x85d   :  { %1097 = vmax.xlane.f32.xlu0 %v1096_v63  ;;  %v1093_v0 = vpop.f32.mrb[38].mxu1 }
 0x85e   :  { %v2089_v4 = vpop.f32.mrb[39].mxu1  ;;  %v1099_v5 = vsel %vm432_vm3, %v1091_v60, -inf  ;;  %v1863_v0 = vld [vmem:[%s2818_s5] ss:$0 sm:$0xff] }
 0x85f   :  { %1100 = vmax.xlane.f32.xlu1 %v1099_v5  ;;  %v50_v4 = vunpack.c.l.bf16 %v2426_v23 }
 0x870   :  { %1168 = vrot.lane.b32.xlu1 %v2515_v25, %s2278_s19 }
 0x874   :  { %2129 = vrot.lane.b32.xlu1 %v2128_v48, %s2278_s19 }
 0x878   :  { %2134 = vrot.lane.b32.xlu1 %v2133_v45, %s2277_s1 }
 0x8ea   :  { %v1098_v58 = vpop.xlane.xlu0 %1097 }
 0x8eb   :  { %v1102_v3 = vsub.f32 %v1041_v53, %v1098_v58 }
 0x8ec   :  { %v1101_v6 = vpop.xlane.xlu1 %1100 }
 0x8ed   :  { %v1104_v7 = vmul.f32 1.442695, %v1102_v3  ;;  %v1103_v8 = vsub.f32 %v1091_v60, %v1101_v6  ;;  %v51_v3 = vunpack.c.h.bf16 %v2426_v23  ;;  %v2189_v23 = vld [vmem:[%s2819_s8 + $0x14] ss:$8 sps:$4 sm:$0xff]  }
 0x8ef   :  { %2249 = vpow2.f32 %v1104_v7  ;;  %v1106_v9 = vmul.f32 1.442695, %v1103_v8 }
 0x8f0   :  { %v1169_v10 = vpop.permute.xlu1 %1168 }
 0x8f1   :  { %2251 = vpow2.f32 %v1106_v9  ;;  %v1174_v11 = vsel %vm460_vm2, %v1169_v10, 0  ;;  %v2184_v10 = vld [vmem:[%s2819_s8] ss:$8 sps:$4 sm:$0xff]  }
 0x8f2   :  { %2097 = vmatpush3.bf16.msra.mxu1 %v1174_v11  ;;  %v2186_v11 = vld [vmem:[%s2819_s8 + $0x4] ss:$8 sps:$4 sm:$0xff]  }
 0x8f3   :  { %1513 = vmatprep.subr.bf16.mxu1 %v2186_v11 }
 0x8f4   :  { %v2130_v40 = vpop.permute.xlu1 %2129 }
 0x8f5   :  { %v2132_v45 = vunpack.i.h.bf16 %v2130_v40 }
 0x8f7   :  { %v1241_v52 = vsel %vm339_vm1, %v2538_v55, %v2132_v45  ;;  %v1873_v45 = vld [vmem:[%s2821_s7] ss:$0 sm:$0xff] }
 0x8f8   :  { %v2135_v42 = vpop.permute.xlu1 %2134 }
 0x8f9   :  { %v2250_v25 = vpop.eup %2249  ;;  %v2137_v49 = vunpack.i.h.bf16 %v2135_v42  ;;  %v2136_v50 = vunpack.i.l.bf16 %v2135_v42 }
 0x8fa   :  { %v1108_v12 = vsel %vm432_vm3, %v2250_v25, 0.0 }
 0x8fb   :  { %v2252_v13 = vpop.eup %2251  ;;  %1109 = vadd.xlane.f32.xlu0 %v1108_v12  ;;  %v1244_v60 = vsel %vm1242_vm4, %v1241_v52, %v2137_v49  ;;  %v2208_v52 = vld [vmem:[%s2822_s10 + $0x40] sm:$0xff]  }
 0x8fc   :  { %v1111_v38 = vsel %vm432_vm3, %v2252_v13, 0.0 }
 0x8ff   :  { %1112 = vadd.xlane.f32.xlu0 %v1111_v38 }
 0x915   :  { %1120 = vrot.lane.b32.xlu0 %v2484_v54, %s2278_s19 }
 0x988   :  { %v1110_v46 = vpop.xlane.xlu0 %1109 }
 0x989   :  { %2253 = vrcp.f32 %v1110_v46 }
 0x98c   :  { %v1113_v48 = vpop.xlane.xlu0 %1112 }
 0x98d   :  { %2255 = vrcp.f32 %v1113_v48 }
 0x990   :  { %v1121_v39 = vpop.permute.xlu0 %1120 }
 0x991   :  { %v1126_v43 = vsel %vm460_vm2, %v1121_v39, 0 }
 0x992   :  { %2091 = vmatpush3.bf16.msra.mxu0 %v1126_v43 }
 0x993   :  { %v2254_v14 = vpop.eup %2253  ;;  %2102 = vmatprep.subr.bf16.mxu0 %v2274_v2 }
 0x994   :  { %v1116_v47 = vmul.f32 %v2254_v14, %v2250_v25  ;;  %v2187_v25 = vld [vmem:[%s2819_s8 + $0x10] ss:$8 sps:$4 sm:$0xff]  }
 0x996   :  { %v1118_v15 = vpack.c.bf16 %v1116_v47, %v1116_v47  ;;  %v2192_v47 = vld [vmem:[%s2819_s8 + $0x24] ss:$8 sps:$4 sm:$0xff]  }
 0x997   :  { %v2256_v16 = vpop.eup %2255 }
 0x998   :  { %v1117_v17 = vmul.f32 %v2256_v16, %v2252_v13  ;;  %2093 = vmatmul.mubr.msk.bf16.vlgmr.msra.gmra.mrb[24].mxu0 %vm432_vm3, %v1118_v15  ;;  %v2190_v15 = vld [vmem:[%s2819_s8 + $0x20] ss:$8 sps:$4 sm:$0xff]   ;;  %v2195_v16 = vld [vmem:[%s2819_s8 + $0x34] ss:$8 sps:$4 sm:$0xff]  }
 0x999   :  { %2118 = vmatprep.mubr.msk.bf16.mxu0 %vm2275_vm0, %v2274_v2  ;;  %2103 = vmatpush3.bf16.msra.mxu0 %v2176_v18  ;;  %v2196_v18 = vld [vmem:[%s2819_s8 + $0x40] ss:$8 sps:$4 sm:$0xff]  }
 0x99a   :  { %v1119_v54 = vpack.c.bf16 %v1117_v17, %v1117_v17  ;;  %2104 = vmatprep.subr.bf16.mxu0 %v2274_v2  ;;  %v2193_v17 = vld [vmem:[%s2819_s8 + $0x30] ss:$8 sps:$4 sm:$0xff]  }
 0x99c   :  { %2099 = vmatmul.mubr.msk.bf16.vlgmr.msra.gmra.mrb[40].mxu1 %vm432_vm3, %v1119_v54  ;;  %v2198_v54 = vld [vmem:[%s2819_s8 + $0x44] ss:$8 sps:$4 sm:$0xff]  }
 0x99d   :  { %1545 = vmatprep.mubr.bf16.mxu1 %v2273_v1  ;;  %2105 = vmatpush3.bf16.msra.mxu0 %v2177_v19  ;;  %v2179_v1 = vld [vmem:[%s2817_s4 + $0x18] sm:$0xff]  }
 0x99e   :  { %2106 = vmatprep.subr.bf16.mxu0 %v2274_v2  ;;  %1514 = vmatpush1.bf16.msra.mxu1 %v2184_v10  ;;  %v2201_v19 = vld [vmem:[%s2819_s8 + $0x54] ss:$8 sps:$4 sm:$0xff]  }
 0x99f   :  { %1515 = vmatprep.subr.bf16.mxu1 %v2189_v23 }
 0x9a1   :  { %2107 = vmatpush3.bf16.msra.mxu0 %v2178_v20  ;;  %v2199_v20 = vld [vmem:[%s2819_s8 + $0x50] ss:$8 sps:$4 sm:$0xff]  }
 0x9a2   :  { %2108 = vmatprep.subr.bf16.mxu0 %v2274_v2  ;;  %1516 = vmatpush1.bf16.msra.mxu1 %v2187_v25 }
 0x9a3   :  { %1517 = vmatprep.subr.bf16.mxu1 %v2192_v47 }
 0x9a5   :  { %2109 = vmatpush3.bf16.msra.mxu0 %v2179_v1  ;;  %v2204_v1 = vld [vmem:[%s2819_s8 + $0x64] ss:$8 sps:$4 sm:$0xff]  }
 0x9a6   :  { %2110 = vmatprep.subr.bf16.mxu0 %v2274_v2  ;;  %1518 = vmatpush1.bf16.msra.mxu1 %v2190_v15 }
 0x9a7   :  { %1519 = vmatprep.subr.bf16.mxu1 %v2195_v16 }
 0x9a9   :  { %2111 = vmatpush3.bf16.msra.mxu0 %v2180_v21  ;;  %v2202_v21 = vld [vmem:[%s2819_s8 + $0x60] ss:$8 sps:$4 sm:$0xff]  }
 0x9aa   :  { %2112 = vmatprep.subr.bf16.mxu0 %v2274_v2  ;;  %1520 = vmatpush1.bf16.msra.mxu1 %v2193_v17 }
 0x9ab   :  { %1521 = vmatprep.subr.bf16.mxu1 %v2198_v54 }
 0x9ad   :  { %2113 = vmatpush3.bf16.msra.mxu0 %v2181_v22  ;;  %v2207_v22 = vld [vmem:[%s2819_s8 + $0x74] ss:$8 sps:$4 sm:$0xff]  }
 0x9ae   :  { %2114 = vmatprep.subr.bf16.mxu0 %v2274_v2  ;;  %1522 = vmatpush1.bf16.msra.mxu1 %v2196_v18 }
 0x9af   :  { %1523 = vmatprep.subr.bf16.mxu1 %v2201_v19 }
 0x9b1   :  { %2115 = vmatpush3.bf16.msra.mxu0 %v2182_v24  ;;  %v2205_v24 = vld [vmem:[%s2819_s8 + $0x70] ss:$8 sps:$4 sm:$0xff]  }
 0x9b2   :  { %2116 = vmatprep.subr.bf16.mxu0 %v2274_v2  ;;  %v2131_v2 = vunpack.i.l.bf16 %v2130_v40  ;;  %1524 = vmatpush1.bf16.msra.mxu1 %v2199_v20 }
 0x9b3   :  { %1525 = vmatprep.subr.bf16.mxu1 %v2204_v1 }
 0x9b4   :  { %v1240_v53 = vsel %vm339_vm1, %v2534_v41, %v2131_v2 }
 0x9b5   :  { %2117 = vmatpush3.bf16.msra.mxu0 %v2183_v26  ;;  %v1243_v59 = vsel %vm1242_vm4, %v1240_v53, %v2136_v50  ;;  %v2209_v53 = vld [vmem:[%s2822_s10] sm:$0xff]  }
 0x9b6   :  { %1526 = vmatpush1.bf16.msra.mxu1 %v2202_v21  ;;  %1964 = vmatprep.subr.bf16.mxu0 %v2208_v52 }
 0x9b7   :  { %1527 = vmatprep.subr.bf16.mxu1 %v2207_v22 }
 0x9ba   :  { %1528 = vmatpush1.bf16.msra.mxu1 %v2205_v24 }
 0xa6b   :  { %v1162_v27 = vpop.f32.mrb[24].mxu0 }
 0xa6c   :  { %v2094_v44 = vpop.f32.mrb[25].mxu0 }
 0xa6d   :  { %v1165_v30 = vpop.f32.mrb[26].mxu0 }
 0xa6e   :  { %v2095_v31 = vpop.f32.mrb[27].mxu0 }
 0xa6f   :  { %v1210_v33 = vpop.f32.mrb[40].mxu1 }
 0xa70   :  { %v2138_v34 = vpack.i.bf16 %v1210_v33, %v1162_v27  ;;  %v2100_v35 = vpop.f32.mrb[41].mxu1 }
 0xa71   :  { %v1213_v36 = vpop.f32.mrb[42].mxu1 }
 0xa72   :  { %2139 = vrot.lane.b32.xlu0 %v2138_v34, %s2276_s18  ;;  %v2101_v37 = vpop.f32.mrb[43].mxu1  ;;  %v1872_v36 = vld [vmem:[%s2820_s6] ss:$0 sm:$0xff] }
 0xae4   :  { %v2140_v51 = vpop.permute.xlu0 %2139 }
 0xae5   :  { %v2142_v56 = vunpack.i.h.bf16 %v2140_v51  ;;  %v2141_v57 = vunpack.i.l.bf16 %v2140_v51 }
 0xae7   :  { %v1247_v61 = vsel %vm1245_vm5, %v1244_v60, %v2142_v56  ;;  %v1246_v62 = vsel %vm1245_vm5, %v1243_v59, %v2141_v57  ;;  %v2210_v56 = vld [vmem:[%s2822_s10 + $0x48] sm:$0xff]   ;;  %v2212_v59 = vld [vmem:[%s2822_s10 + $0x50] sm:$0xff]  }
 0xae8   :  { %v1248_v63 = vpack.c.bf16 %v1247_v61, %v1246_v62  ;;  %v2211_v57 = vld [vmem:[%s2822_s10 + $0x8] sm:$0xff]   ;;  %v2213_v60 = vld [vmem:[%s2822_s10 + $0x10] sm:$0xff]   ;;  %v2214_v61 = vld [vmem:[%s2822_s10 + $0x58] sm:$0xff]  }
 0xae9   :  { %v2215_v62 = vld [vmem:[%s2822_s10 + $0x18] sm:$0xff]  }
 0xaea   :  { %2119 = vmatmul.mubr.bf16.vlgmr.msra.gmra.mrb[28].mxu0 %v1248_v63  ;;  %v2216_v63 = vld [vmem:[%s2822_s10 + $0x60] sm:$0xff]  }
 0xaeb   :  { %1965 = vmatpush3.bf16.msra.mxu0 %v2209_v53 }
 0xaec   :  { %1966 = vmatprep.subr.bf16.mxu0 %v2210_v56 }
 0xaef   :  { %1967 = vmatpush3.bf16.msra.mxu0 %v2211_v57 }
 0xaf0   :  { %1968 = vmatprep.subr.bf16.mxu0 %v2212_v59  ;;  %v1890_v59 = vld [vmem:[%s2824_s11] ss:$0 sm:$0xff] }
 0xaf3   :  { %1969 = vmatpush3.bf16.msra.mxu0 %v2213_v60 }
 0xaf4   :  { %1970 = vmatprep.subr.bf16.mxu0 %v2214_v61 }
 0xaf7   :  { %1971 = vmatpush3.bf16.msra.mxu0 %v2215_v62 }
 0xaf8   :  { %1972 = vmatprep.subr.bf16.mxu0 %v2216_v63 }
 0xbbd   :  { %v1354_v5 = vpop.f32.mrb[28].mxu0 }
 0xbbe   :  { %v1355_v58 = vadd.f32 %v1863_v0, %v1354_v5  ;;  %v2120_v55 = vpop.f32.mrb[29].mxu0  ;;  %v2219_v5 = vld [vmem:[%s2822_s10 + $0x28] sm:$0xff]  }
 0xbbf   :  { %v1357_v41 = vpop.f32.mrb[30].mxu0  ;;  %v2221_v55 = vld [vmem:[%s2822_s10 + $0x30] sm:$0xff]  }
 0xbc0   :  { %v1358_v6 = vadd.f32 %v1863_v0, %v1357_v41  ;;  %v2121_v7 = vpop.f32.mrb[31].mxu0  ;;  %v1361_v8 = vadd.f32 %v1355_v58, %v50_v4  ;;  %v2217_v0 = vld [vmem:[%s2822_s10 + $0x20] sm:$0xff]   ;;  %v2218_v4 = vld [vmem:[%s2822_s10 + $0x68] sm:$0xff]   ;;  %v2220_v58 = vld [vmem:[%s2822_s10 + $0x70] sm:$0xff]  }
 0xbc1   :  { %1973 = vmatpush3.bf16.msra.mxu0 %v2217_v0  ;;  %v2223_v41 = vld [vmem:[%s2822_s10 + $0x38] sm:$0xff]  }
 0xbc2   :  { %1365 = vadd.xlane.f32.xlu1 %v1361_v8  ;;  %v1362_v9 = vadd.f32 %v1358_v6, %v51_v3  ;;  %1974 = vmatprep.subr.bf16.mxu0 %v2218_v4  ;;  %v2222_v3 = vld [vmem:[%s2822_s10 + $0x78] sm:$0xff]   ;;  %v1421_v6 = vld [vmem:[%s2823_s9] sm:$0x3] }
 0xbc3   :  { %v1426_v7 = vrot.slane %v1421_v6, %v88_v32 }
 0xbc4   :  { %1367 = vadd.xlane.f32.xlu0 %v1362_v9 }
 0xbc5   :  { %1975 = vmatpush3.bf16.msra.mxu0 %v2219_v5 }
 0xbc6   :  { %1976 = vmatprep.subr.bf16.mxu0 %v2220_v58 }
 0xbc9   :  { %1977 = vmatpush3.bf16.msra.mxu0 %v2221_v55 }
 0xbca   :  { %1978 = vmatprep.subr.bf16.mxu0 %v2222_v3 }
 0xbcd   :  { %1979 = vmatpush3.bf16.msra.mxu0 %v2223_v41 }
 0xc4f   :  { %v1366_v12 = vpop.xlane.xlu1 %1365 }
 0xc50   :  { %v1370_v13 = vmul.f32 0.0078125, %v1366_v12 }
 0xc51   :  { %v1368_v38 = vpop.xlane.xlu0 %1367 }
 0xc52   :  { %v1372_v46 = vsub.f32 %v1361_v8, %v1370_v13  ;;  %v1371_v48 = vmul.f32 0.0078125, %v1368_v38  ;;  %v1430_v8 = vrot.slane %v1421_v6, %v92_v29 }
 0xc54   :  { %v1373_v39 = vsub.f32 %v1362_v9, %v1371_v48  ;;  %v1374_v43 = vmul.f32 %v1372_v46, %v1372_v46 }
 0xc56   :  { %1376 = vadd.xlane.f32.xlu0 %v1374_v43  ;;  %v1375_v14 = vmul.f32 %v1373_v39, %v1373_v39 }
 0xc5a   :  { %1378 = vadd.xlane.f32.xlu0 %v1375_v14 }
 0xce3   :  { %v1377_v26 = vpop.xlane.xlu0 %1376 }
 0xce4   :  { %v1380_v27 = vmul.f32 0.0078125, %v1377_v26 }
 0xce6   :  { %v1382_v44 = vadd.f32 1e-05, %v1380_v27 }
 0xce7   :  { %v1379_v30 = vpop.xlane.xlu0 %1378 }
 0xce8   :  { %2257 = vrsqrt.f32 %v1382_v44  ;;  %v1381_v31 = vmul.f32 0.0078125, %v1379_v30 }
 0xcea   :  { %v1383_v33 = vadd.f32 1e-05, %v1381_v31 }
 0xcec   :  { %2259 = vrsqrt.f32 %v1383_v33 }
 0xcf2   :  { %v2258_v34 = vpop.eup %2257 }
 0xcf3   :  { %v1386_v35 = vmul.f32 %v2258_v34, %v1372_v46 }
 0xcf5   :  { %v1394_v42 = vmul.f32 %v1872_v36, %v1386_v35 }
 0xcf6   :  { %v2260_v37 = vpop.eup %2259 }
 0xcf7   :  { %v1387_v40 = vmul.f32 %v2260_v37, %v1373_v39  ;;  %v2738_v49 = vadd.f32 %v1873_v45, %v1394_v42 }
 0xcf9   :  { %v1395_v2 = vmul.f32 %v1872_v36, %v1387_v40 }
 0xcfb   :  { %v2740_v50 = vadd.f32 %v1873_v45, %v1395_v2 }
 0xcfd   :  { %v1404_v51 = vpack.c.bf16 %v2740_v50, %v2738_v49 }
 0xcff   :  { %1546 = vmatmul.mubr.bf16.vlgmr.msra.gmra.mrb[44].mxu1 %v1404_v51 }
 0xdd2   :  { %v1547_v9 = vpop.f32.mrb[44].mxu1 }
 0xdd3   :  { %v1548_v10 = vadd.f32 %v1547_v9, %v1426_v7  ;;  %v1549_v11 = vpop.f32.mrb[45].mxu1 }
 0xdd4   :  { %v1550_v25 = vadd.f32 %v1549_v11, %v1430_v8  ;;  %v1551_v23 = vpop.f32.mrb[46].mxu1 }
 0xdd5   :  { %v1556_v12 = vmul.f32 %v1548_v10, %v1548_v10  ;;  %v1552_v13 = vadd.f32 %v1551_v23, %v1426_v7  ;;  %v1553_v38 = vpop.f32.mrb[47].mxu1 }
 0xdd6   :  { %v1557_v46 = vmul.f32 %v1550_v25, %v1550_v25  ;;  %v1554_v48 = vadd.f32 %v1553_v38, %v1430_v8 }
 0xdd7   :  { %v1560_v39 = vmul.f32 %v1556_v12, %v1548_v10  ;;  %v1558_v43 = vmul.f32 %v1552_v13, %v1552_v13 }
 0xdd8   :  { %v1561_v14 = vmul.f32 %v1557_v46, %v1550_v25  ;;  %v1559_v47 = vmul.f32 %v1554_v48, %v1554_v48  ;;  %v1907_v46 = vld [vmem:[%s2825_s12] ss:$0 sm:$0xff] }
 0xdd9   :  { %v1564_v15 = vmul.f32 0.044715, %v1560_v39  ;;  %v1562_v16 = vmul.f32 %v1558_v43, %v1552_v13 }
 0xdda   :  { %v1565_v32 = vmul.f32 0.044715, %v1561_v14  ;;  %v1563_v17 = vmul.f32 %v1559_v47, %v1554_v48  ;;  %v1908_v47 = vld [vmem:[%s2826_s13] ss:$0 sm:$0xff] }
 0xddb   :  { %v1568_v28 = vadd.f32 %v1564_v15, %v1548_v10  ;;  %v1566_v29 = vmul.f32 0.044715, %v1562_v16 }
 0xddc   :  { %v1569_v54 = vadd.f32 %v1565_v32, %v1550_v25  ;;  %v1567_v18 = vmul.f32 0.044715, %v1563_v17 }
 0xddd   :  { %v1572_v19 = vmul.f32 0.7978846, %v1568_v28  ;;  %v1570_v20 = vadd.f32 %v1566_v29, %v1552_v13 }
 0xdde   :  { %v1573_v1 = vmul.f32 0.7978846, %v1569_v54  ;;  %v1571_v21 = vadd.f32 %v1567_v18, %v1554_v48 }
 0xddf   :  { %2261 = vtanh.f32 %v1572_v19  ;;  %v1574_v22 = vmul.f32 0.7978846, %v1570_v20 }
 0xde0   :  { %2263 = vtanh.f32 %v1573_v1  ;;  %v1575_v24 = vmul.f32 0.7978846, %v1571_v21 }
 0xde1   :  { %2265 = vtanh.f32 %v1574_v22 }
 0xde2   :  { %2267 = vtanh.f32 %v1575_v24 }
 0xde9   :  { %v2262_v26 = vpop.eup %2261 }
 0xdea   :  { %v2264_v27 = vpop.eup %2263  ;;  %v1580_v44 = vadd.f32 1.0, %v2262_v26 }
 0xdeb   :  { %v2266_v30 = vpop.eup %2265  ;;  %v1581_v31 = vadd.f32 1.0, %v2264_v27 }
 0xdec   :  { %v2268_v33 = vpop.eup %2267  ;;  %v1584_v34 = vmul.f32 0.5, %v1580_v44  ;;  %v1582_v35 = vadd.f32 1.0, %v2266_v30 }
 0xded   :  { %v1583_v36 = vadd.f32 1.0, %v2268_v33  ;;  %v1585_v37 = vmul.f32 0.5, %v1581_v31 }
 0xdee   :  { %v1586_v40 = vmul.f32 0.5, %v1582_v35  ;;  %v1588_v45 = vmul.f32 %v1584_v34, %v1548_v10 }
 0xdef   :  { %v1587_v42 = vmul.f32 0.5, %v1583_v36  ;;  %v1589_v51 = vmul.f32 %v1585_v37, %v1550_v25 }
 0xdf0   :  { %v1590_v2 = vmul.f32 %v1586_v40, %v1552_v13 }
 0xdf1   :  { %v1591_v52 = vmul.f32 %v1587_v42, %v1554_v48 }
 0xdf2   :  { %v1592_v53 = vpack.c.bf16 %v1590_v2, %v1588_v45 }
 0xdf3   :  { %v1593_v56 = vpack.c.bf16 %v1591_v52, %v1589_v51 }
 0xdf5   :  { %1761 = vmatprep.mubr.bf16.mxu0 %v1593_v56 }
 0xdf6   :  { %1762 = vmatmul.mubr.bf16.vlgmr.msra.gmra.mrb[32].mxu0 %v1592_v53 }
 0xec9   :  { %v1980_v57 = vpop.f32.mrb[32].mxu0 }
 0xeca   :  { %v1981_v60 = vpop.f32.mrb[33].mxu0 }
 0xecb   :  { %v1982_v61 = vadd.f32 %v1981_v60, %v1980_v57  ;;  %v1983_v62 = vpop.f32.mrb[34].mxu0 }
 0xecc   :  { %v1984_v63 = vpop.f32.mrb[35].mxu0 }
 0xecd   :  { %v1764_v0 = vadd.f32 %v1982_v61, %v1890_v59  ;;  %v1985_v4 = vadd.f32 %v1984_v63, %v1983_v62 }
 0xecf   :  { %v1767_v5 = vadd.f32 %v1985_v4, %v1890_v59  ;;  %v1770_v58 = vadd.f32 %v1764_v0, %v2738_v49 }
 0xed1   :  { %1774 = vadd.xlane.f32.xlu1 %v1770_v58  ;;  %v1771_v55 = vadd.f32 %v1767_v5, %v2740_v50 }
 0xed3   :  { %1776 = vadd.xlane.f32.xlu0 %v1771_v55 }
 0xf5e   :  { %v1775_v3 = vpop.xlane.xlu1 %1774 }
 0xf5f   :  { %v1778_v41 = vmul.f32 0.0078125, %v1775_v3 }
 0xf60   :  { %v1777_v6 = vpop.xlane.xlu0 %1776 }
 0xf61   :  { %v1780_v7 = vsub.f32 %v1770_v58, %v1778_v41  ;;  %v1779_v8 = vmul.f32 0.0078125, %v1777_v6 }
 0xf63   :  { %v1781_v9 = vsub.f32 %v1771_v55, %v1779_v8  ;;  %v1782_v10 = vmul.f32 %v1780_v7, %v1780_v7 }
 0xf65   :  { %1784 = vadd.xlane.f32.xlu1 %v1782_v10  ;;  %v1783_v11 = vmul.f32 %v1781_v9, %v1781_v9 }
 0xf67   :  { %1786 = vadd.xlane.f32.xlu0 %v1783_v11 }
 0xff2   :  { %v1785_v25 = vpop.xlane.xlu1 %1784 }
 0xff3   :  { %v1788_v23 = vmul.f32 0.0078125, %v1785_v25 }
 0xff4   :  { %v1787_v12 = vpop.xlane.xlu0 %1786 }
 0xff5   :  { %v1790_v13 = vadd.f32 1e-05, %v1788_v23  ;;  %v1789_v38 = vmul.f32 0.0078125, %v1787_v12 }
 0xff7   :  { %2269 = vrsqrt.f32 %v1790_v13  ;;  %v1791_v49 = vadd.f32 1e-05, %v1789_v38 }
 0xff9   :  { %2271 = vrsqrt.f32 %v1791_v49 }
0x1001   :  { %v2270_v50 = vpop.eup %2269 }
0x1002   :  { %v1794_v48 = vmul.f32 %v2270_v50, %v1780_v7 }
0x1003   :  { %v2272_v39 = vpop.eup %2271 }
0x1004   :  { %v1802_v43 = vmul.f32 %v1907_v46, %v1794_v48  ;;  %v1795_v14 = vmul.f32 %v2272_v39, %v1781_v9 }
0x1006   :  { %v1803_v15 = vmul.f32 %v1907_v46, %v1795_v14  ;;  %v1810_v16 = vadd.f32 %v1908_v47, %v1802_v43 }
0x1008   :  { %v1811_v32 = vadd.f32 %v1908_v47, %v1803_v15 }
0x100a   :  { %v1912_v17 = vpack.c.bf16 %v1811_v32, %v1810_v16 }
0x100c   :  { %1913 = vst [vmem:[%s2827_s14] sm:$0xff] %v1912_v17  }

</bundles_post_ra>
